<compile_context>
chip_gen: v7x
topology: tpu7x:2x2x1
jax: 0.10.0
libtpu: 0.0.40
codegen_flags: <defaults>
</compile_context>

<pallas_src>
import jax
import jax.numpy as jnp
from jax.experimental import pallas as pl
from jax.experimental.pallas import tpu as pltpu

EMBD_SIZE = 768      # VC1_BASE_NAME (ViT-B) embedding size
PATCH = 16           # ViT-B patch size -> C*ph*pw = 3*16*16 = 768
OUT_DIM = 3          # head output
HEAD_PAD = 128       # lane-dense padded output width (cols 3..127 are zero)
TB_MAX = 256         # max batch tile (multiple of 8; fills the MXU M dim)


# ---------------------------------------------------------------------------
# Kernel
# ---------------------------------------------------------------------------
def _localization_kernel(pooled_ref, w_pe_ref, b_pe_ref,
                         w_head_ref, b_head_ref, out_ref):
    # TODO(synk): full pretrained VC-1 ViT backbone (attention blocks) is not
    # reproducible in-script; a patch-embed + mean-pool encoder stands in.

    # Encoder: (TB,768) x (768,768) bf16 MXU matmul, f32 accumulation + bias.
    # (The mean over patches commutes with this linear map and is hoisted to
    #  the wrapper, so the kernel never touches per-patch data.)
    emb = jnp.dot(pooled_ref[...], w_pe_ref[...],
                  preferred_element_type=jnp.float32) + b_pe_ref[...]     # (TB, 768)

    # fc head 768->256->64->3 (no nonlinearities) folded at trace time into a
    # single lane-dense (768,128) bf16 matrix + f32 bias; unmasked store.
    out_ref[...] = jnp.dot(emb.astype(jnp.bfloat16), w_head_ref[...],
                           preferred_element_type=jnp.float32) + b_head_ref[...]


# ---------------------------------------------------------------------------
# Host-side prep (pooling + trace-time algebraic folding)
# ---------------------------------------------------------------------------
def _round_up(x, m):
    return -(-x // m) * m


def _pool_patches(img):
    # Mean over the patch grid, done directly on the image (single HBM pass,
    # no (B,P,768) intermediate).  Feature order = c*ph*pw + i*pw + j, matching
    # the patch-embedding weight layout.
    B, C, H, W = img.shape
    x = img.reshape(B, C, H // PATCH, PATCH, W // PATCH, PATCH)
    x = x.mean(axis=(2, 4))                                  # (B, C, 16, 16)
    return x.reshape(B, C * PATCH * PATCH)                   # (B, 768)


def _patchify(img):
    # Per-patch layout; used only by the f32 reference.
    B, C, H, W = img.shape
    x = img.reshape(B, C, H // PATCH, PATCH, W // PATCH, PATCH)
    x = x.transpose(0, 2, 4, 1, 3, 5)
    return x.reshape(B, (H // PATCH) * (W // PATCH), C * PATCH * PATCH)


def _fold_params(params):
    # Fold ImageNet normalization (model_transforms) into the patch-embed:
    #   ((x - mean)/std) @ W + b == x @ (W * inv_std[:,None]) + (b - (mean*inv_std) @ W)
    mean = jnp.array([0.485, 0.456, 0.406], jnp.float32)
    std = jnp.array([0.229, 0.224, 0.225], jnp.float32)
    inv_std_v = jnp.repeat(1.0 / std, PATCH * PATCH)                       # (768,)
    mean_v = jnp.repeat(mean, PATCH * PATCH)                               # (768,)
    w_pe = params['w_pe'] * inv_std_v[:, None]
    b_pe = params['b_pe'] - (mean_v * inv_std_v)[None, :] @ params['w_pe']

    # Fold the activation-free 3-layer head into one matrix + bias, pad the
    # output dim to 128 lanes (zero columns) for an unmasked, lane-dense store.
    w_head = params['w1'] @ params['w2'] @ params['w3']                    # (768, 3)
    b_head = (params['b1'] @ params['w2'] + params['b2']) @ params['w3'] + params['b3']
    w_head = jnp.pad(w_head, ((0, 0), (0, HEAD_PAD - OUT_DIM)))            # (768, 128)
    b_head = jnp.pad(b_head, ((0, 0), (0, HEAD_PAD - OUT_DIM)))            # (1, 128)

    return (w_pe.astype(jnp.bfloat16), b_pe.astype(jnp.float32),
            w_head.astype(jnp.bfloat16), b_head.astype(jnp.float32))


# ---------------------------------------------------------------------------
# Pallas wrapper
# ---------------------------------------------------------------------------
@jax.jit
def localization_forward(img, params):
    pooled = _pool_patches(img).astype(jnp.bfloat16)          # (B, 768) bf16
    w_pe, b_pe, w_head, b_head = _fold_params(params)

    B = pooled.shape[0]
    tb = min(TB_MAX, _round_up(B, 8))      # batch tile: multiple of 8, up to 256
    Bp = _round_up(B, tb)
    if Bp != B:
        pooled = jnp.pad(pooled, ((0, Bp - B), (0, 0)))
    num_tiles = Bp // tb

    out = pl.pallas_call(
        _localization_kernel,
        out_shape=jax.ShapeDtypeStruct((Bp, HEAD_PAD), jnp.float32),
        grid=(num_tiles,),
        in_specs=[
            pl.BlockSpec((tb, EMBD_SIZE), lambda i: (i, 0)),        # pooled tiles
            pl.BlockSpec((EMBD_SIZE, EMBD_SIZE), lambda i: (0, 0)),  # w_pe (resident)
            pl.BlockSpec((1, EMBD_SIZE), lambda i: (0, 0)),          # b_pe (resident)
            pl.BlockSpec((EMBD_SIZE, HEAD_PAD), lambda i: (0, 0)),   # folded head W
            pl.BlockSpec((1, HEAD_PAD), lambda i: (0, 0)),           # folded head b
        ],
        out_specs=pl.BlockSpec((tb, HEAD_PAD), lambda i: (i, 0)),
        compiler_params=pltpu.CompilerParams(
            dimension_semantics=("parallel",)),   # batch axis: 2 TCs on v7x
    )(pooled, w_pe, b_pe, w_head, b_head)

    return out[:B, :OUT_DIM]


# ---------------------------------------------------------------------------
# Params + references
# ---------------------------------------------------------------------------
def init_params(key):
    ks = jax.random.split(key, 8)

    def lin(kw, kb, fan_in, fan_out):
        scale = 1.0 / jnp.sqrt(jnp.float32(fan_in))
        w = jax.random.normal(kw, (fan_in, fan_out), jnp.float32) * scale
        b = jax.random.normal(kb, (1, fan_out), jnp.float32) * 0.01
        return w, b

    w_pe, b_pe = lin(ks[0], ks[1], 3 * PATCH * PATCH, EMBD_SIZE)
    w1, b1 = lin(ks[2], ks[3], EMBD_SIZE, 256)
    w2, b2 = lin(ks[4], ks[5], 256, 64)
    w3, b3 = lin(ks[6], ks[7], 64, 3)
    return dict(w_pe=w_pe, b_pe=b_pe, w1=w1, b1=b1, w2=w2, b2=b2, w3=w3, b3=b3)


def reference_forward_folded(img, params):
    # Same prepared (pooled, folded, bf16-cast) operands as the kernel, plain
    # jnp math.  Tight check that the Pallas kernel itself is correct.
    pooled = _pool_patches(img).astype(jnp.bfloat16)
    w_pe, b_pe, w_head, b_head = _fold_params(params)
    emb = jnp.dot(pooled, w_pe, preferred_element_type=jnp.float32) + b_pe
    out = jnp.dot(emb.astype(jnp.bfloat16), w_head,
                  preferred_element_type=jnp.float32) + b_head
    return out[:, :OUT_DIM]


def reference_forward_f32(img, params):
    # Original module math in f32: normalize -> per-patch embed -> mean -> head.
    mean = jnp.array([0.485, 0.456, 0.406], jnp.float32).reshape(1, 3, 1, 1)
    std = jnp.array([0.229, 0.224, 0.225], jnp.float32).reshape(1, 3, 1, 1)
    patches = _patchify((img - mean) / std)
    emb = jnp.einsum('bpd,de->bpe', patches, params['w_pe']) + params['b_pe']
    embed = jnp.mean(emb, axis=1)
    h1 = embed @ params['w1'] + params['b1']
    h2 = h1 @ params['w2'] + params['b2']
    return h2 @ params['w3'] + params['b3']


if __name__ == "__main__":
    key = jax.random.PRNGKey(0)
    k_img, k_par = jax.random.split(key)
    # small shapes: batch=2, 3 channels, 32x32 image -> 4 patches of 16x16
    img = jax.random.uniform(k_img, (2, 3, 32, 32), dtype=jnp.float32)
    params = init_params(k_par)

    out = jax.block_until_ready(localization_forward(img, params))
    assert out.shape == (2, 3), out.shape

    # tight check: kernel vs identical (pooled, folded, bf16) math in plain XLA
    ref_tight = reference_forward_folded(img, params)
    assert jnp.allclose(out, ref_tight, atol=2e-3, rtol=2e-3), (out, ref_tight)

    # sanity check: algebraic refactoring + bf16 inputs vs full-f32 module math
    ref_f32 = reference_forward_f32(img, params)
    assert jnp.allclose(out, ref_f32, atol=1e-1, rtol=5e-2), (out, ref_f32)

    print("KERNEL_OK")
</pallas_src>

<mosaic_0001>
module attributes {stable_mosaic.version = 11 : i64} {
  func.func @_localization_kernel(%arg0: i32, %arg1: memref<8x768xbf16, #tpu.memory_space<vmem>>, %arg2: memref<768x768xbf16, #tpu.memory_space<vmem>>, %arg3: memref<1x768xf32, #tpu.memory_space<vmem>>, %arg4: memref<768x128xbf16, #tpu.memory_space<vmem>>, %arg5: memref<1x128xf32, #tpu.memory_space<vmem>>, %arg6: memref<8x128xf32, #tpu.memory_space<vmem>>) attributes {dimension_semantics = [#tpu.dimension_semantics<parallel>], iteration_bounds = array<i64: 1>, scalar_prefetch = 0 : i64, scratch_operands = 0 : i64, tpu.core_type = #tpu.core_type<tc>, window_params = [{transform_indices = @transform_0, window_bounds = array<i64: 8, 768>}, {pipeline_mode = #tpu.pipeline_mode<synchronous>, transform_indices = @transform_1, window_bounds = array<i64: 768, 768>}, {pipeline_mode = #tpu.pipeline_mode<synchronous>, transform_indices = @transform_2, window_bounds = array<i64: 1, 768>}, {pipeline_mode = #tpu.pipeline_mode<synchronous>, transform_indices = @transform_3, window_bounds = array<i64: 768, 128>}, {pipeline_mode = #tpu.pipeline_mode<synchronous>, transform_indices = @transform_4, window_bounds = array<i64: 1, 128>}, {transform_indices = @transform_5, window_bounds = array<i64: 8, 128>}]} {
    %c0 = arith.constant 0 : index
    %c0_0 = arith.constant 0 : index
    %0 = vector.load %arg1[%c0, %c0_0] : memref<8x768xbf16, #tpu.memory_space<vmem>>, vector<8x768xbf16>
    %c0_1 = arith.constant 0 : index
    %c0_2 = arith.constant 0 : index
    %1 = vector.load %arg2[%c0_1, %c0_2] : memref<768x768xbf16, #tpu.memory_space<vmem>>, vector<768x768xbf16>
    %cst = arith.constant dense<0.000000e+00> : vector<8x768xf32>
    %2 = tpu.matmul %0, %1, %cst {dimension_numbers = #tpu.dot_dimension_numbers<[1], [0], [0], [1], [0, 0, 1, 1], [], []>} : vector<8x768xbf16>, vector<768x768xbf16>, vector<8x768xf32> -> vector<8x768xf32>
    %c0_3 = arith.constant 0 : index
    %c0_4 = arith.constant 0 : index
    %3 = vector.load %arg3[%c0_3, %c0_4] : memref<1x768xf32, #tpu.memory_space<vmem>>, vector<1x768xf32>
    %4 = vector.broadcast %3 : vector<1x768xf32> to vector<8x768xf32>
    %5 = arith.addf %2, %4 : vector<8x768xf32>
    %6 = arith.truncf %5 : vector<8x768xf32> to vector<8x768xbf16>
    %c0_5 = arith.constant 0 : index
    %c0_6 = arith.constant 0 : index
    %7 = vector.load %arg4[%c0_5, %c0_6] : memref<768x128xbf16, #tpu.memory_space<vmem>>, vector<768x128xbf16>
    %cst_7 = arith.constant dense<0.000000e+00> : vector<8x128xf32>
    %8 = tpu.matmul %6, %7, %cst_7 {dimension_numbers = #tpu.dot_dimension_numbers<[1], [0], [0], [1], [0, 0, 1, 1], [], []>} : vector<8x768xbf16>, vector<768x128xbf16>, vector<8x128xf32> -> vector<8x128xf32>
    %c0_8 = arith.constant 0 : index
    %c0_9 = arith.constant 0 : index
    %9 = vector.load %arg5[%c0_8, %c0_9] : memref<1x128xf32, #tpu.memory_space<vmem>>, vector<1x128xf32>
    %10 = vector.broadcast %9 : vector<1x128xf32> to vector<8x128xf32>
    %11 = arith.addf %8, %10 : vector<8x128xf32>
    %c0_10 = arith.constant 0 : index
    %c0_11 = arith.constant 0 : index
    %12 = vector.load %arg6[%c0_10, %c0_11] : memref<8x128xf32, #tpu.memory_space<vmem>>, vector<8x128xf32>
    tpu.vector_store %arg6[%c0_10, %c0_11], %11 {strides = array<i32>} : memref<8x128xf32, #tpu.memory_space<vmem>>, vector<8x128xf32>,
    return
  }
  func.func @transform_0(%arg0: i32) -> (i32, i32) {
    %c0_i32 = arith.constant 0 : i32
    %c0_i32_0 = arith.constant 0 : i32
    return %arg0, %c0_i32 : i32, i32
  }
  func.func @transform_1(%arg0: i32) -> (i32, i32) {
    %c0_i32 = arith.constant 0 : i32
    %c0_i32_0 = arith.constant 0 : i32
    %c0_i32_1 = arith.constant 0 : i32
    return %c0_i32, %c0_i32_0 : i32, i32
  }
  func.func @transform_2(%arg0: i32) -> (i32, i32) {
    %c0_i32 = arith.constant 0 : i32
    %c0_i32_0 = arith.constant 0 : i32
    %c0_i32_1 = arith.constant 0 : i32
    return %c0_i32, %c0_i32_0 : i32, i32
  }
  func.func @transform_3(%arg0: i32) -> (i32, i32) {
    %c0_i32 = arith.constant 0 : i32
    %c0_i32_0 = arith.constant 0 : i32
    %c0_i32_1 = arith.constant 0 : i32
    return %c0_i32, %c0_i32_0 : i32, i32
  }
  func.func @transform_4(%arg0: i32) -> (i32, i32) {
    %c0_i32 = arith.constant 0 : i32
    %c0_i32_0 = arith.constant 0 : i32
    %c0_i32_1 = arith.constant 0 : i32
    return %c0_i32, %c0_i32_0 : i32, i32
  }
  func.func @transform_5(%arg0: i32) -> (i32, i32) {
    %c0_i32 = arith.constant 0 : i32
    %c0_i32_0 = arith.constant 0 : i32
    return %arg0, %c0_i32 : i32, i32
  }
}

</mosaic_0001>

<bundles_post_ra>
// kernel: mul.1
= control target key start
LH: loop header
LB: loop body
LE: loop exit
PB: predicated region body
PF: predicated region fallthrough
CT: control target
= control target key end

     0   :  { %s34_s0 = inlined_call_operand.vmem [shape: f32[768], index: 0, kind: input, shape index: {}]   ;;  %s35_s1 = inlined_call_operand.vmem [shape: f32[768], index: 1, kind: input, shape index: {}]   ;;  %s36_s2 = inlined_call_operand.vmem [shape: f32[768], index: 2, kind: output, shape index: {}]  }
   0x1   :  { %v3_v0 = vld [vmem:[%s34_s0] sm:$0x3f] }
   0x2   :  { %v4_v1 = vld [vmem:[%s35_s1] sm:$0x3f] }
   0x3   :  { %v7_v2 = vmul.f32 %v4_v1, %v3_v0 }
   0x5   :  { %9 = vst [vmem:[%s36_s2] sm:$0xff] %v7_v2 }

// kernel: mul.6
= control target key start
LH: loop header
LB: loop body
LE: loop exit
PB: predicated region body
PF: predicated region fallthrough
CT: control target
= control target key end

     0   :  { %s40_s0 = inlined_call_operand.vmem [shape: f32[3,256], index: 0, kind: input, shape index: {}]   ;;  %s41_s1 = inlined_call_operand.vmem [shape: f32[768], index: 1, kind: output, shape index: {}]  }
   0x1   :  { %v16_v0 = vld [vmem:[%s40_s0 + $0x4] sm:$0xf]  ;;  %v8_v1 = vld [vmem:[%s40_s0] sm:$0xf] }
   0x2   :  { %7 = vst [vmem:[#allocation0 + $0x8] sm:$0xf] %v16_v0  ;;  %9 = vst [vmem:[#allocation0] sm:$0xf] %v8_v1 }
   0x9   :  { %v10_v2 = vld [vmem:[#allocation0] sm:$0x7]   ;;  %v13_v3 = vld [vmem:[#allocation0 + $0x8] sm:$0x7]  }
   0xa   :  { %11 = vst [vmem:[%s41_s1] ss:$2 sm:$0x7] %v10_v2   ;;  %17 = vst [vmem:[%s41_s1 + $0x1] ss:$2 sm:$0x7] %v13_v3  }

// kernel: localization_forward.1
= control target key start
LH: loop header
LB: loop body
LE: loop exit
PB: predicated region body
PF: predicated region fallthrough
CT: control target
= control target key end

     0   :  { %s4733_s1 = inlined_call_operand.vmem [shape: bf16[768,768], index: 1, kind: input, shape index: {}]   ;;  %s4734_s0 = inlined_call_operand.vmem [shape: bf16[8,768], index: 0, kind: input, shape index: {}]   ;;  %s4735_s3 = inlined_call_operand.vmem [shape: bf16[768,128], index: 3, kind: input, shape index: {}]   ;;  %s4736_s2 = inlined_call_operand.vmem [shape: f32[1,768], index: 2, kind: input, shape index: {}]   ;;  %s4737_s4 = inlined_call_operand.vmem [shape: f32[1,128], index: 4, kind: input, shape index: {}]   ;;  %s4738_s5 = inlined_call_operand.vmem [shape: f32[8,128], index: 5, kind: output, shape index: {}]  }
   0x1   :  { %v3133_v0 = vld [vmem:[%s4733_s1 + $0x4] ss:$24 sps:$4 sm:$0xff]   ;;  %v3137_v2 = vld [vmem:[%s4733_s1] ss:$24 sps:$4 sm:$0xff]   ;;  %v3139_v4 = vld [vmem:[%s4733_s1 + $0x34] ss:$24 sps:$4 sm:$0xff]  }
   0x2   :  { %v3135_v1 = vld [vmem:[%s4733_s1 + $0x304] ss:$24 sps:$4 sm:$0xff]   ;;  %1805 = vmatprep.subr.bf16.mxu1 %v3133_v0  ;;  %v3138_v3 = vld [vmem:[%s4733_s1 + $0x300] ss:$24 sps:$4 sm:$0xff]   ;;  %v3141_v5 = vld [vmem:[%s4733_s1 + $0x334] ss:$24 sps:$4 sm:$0xff]  }
   0x3   :  { %1846 = vmatprep.subr.bf16.mxu0 %v3135_v1  ;;  %1806 = vmatpush1.bf16.msra.mxu1 %v3137_v2  ;;  %v3143_v6 = vld [vmem:[%s4733_s1 + $0x30] ss:$24 sps:$4 sm:$0xff]   ;;  %v3145_v8 = vld [vmem:[%s4733_s1 + $0x64] ss:$24 sps:$4 sm:$0xff]   ;;  %v3149_v10 = vld [vmem:[%s4733_s1 + $0x60] ss:$24 sps:$4 sm:$0xff]  }
   0x4   :  { %1847 = vmatpush1.bf16.msra.mxu0 %v3138_v3  ;;  %1807 = vmatprep.subr.bf16.mxu1 %v3139_v4  ;;  %v3144_v7 = vld [vmem:[%s4733_s1 + $0x330] ss:$24 sps:$4 sm:$0xff]   ;;  %v3147_v9 = vld [vmem:[%s4733_s1 + $0x364] ss:$24 sps:$4 sm:$0xff]   ;;  %v3150_v11 = vld [vmem:[%s4733_s1 + $0x360] ss:$24 sps:$4 sm:$0xff]  }
   0x5   :  { %1848 = vmatprep.subr.bf16.mxu0 %v3141_v5  ;;  %v3151_v12 = vld [vmem:[%s4733_s1 + $0x94] ss:$24 sps:$4 sm:$0xff]   ;;  %v3155_v14 = vld [vmem:[%s4733_s1 + $0x90] ss:$24 sps:$4 sm:$0xff]   ;;  %v3157_v16 = vld [vmem:[%s4733_s1 + $0xc4] ss:$24 sps:$4 sm:$0xff]  }
   0x6   :  { %v3153_v13 = vld [vmem:[%s4733_s1 + $0x394] ss:$24 sps:$4 sm:$0xff]   ;;  %v3156_v15 = vld [vmem:[%s4733_s1 + $0x390] ss:$24 sps:$4 sm:$0xff]   ;;  %v3159_v17 = vld [vmem:[%s4733_s1 + $0x3c4] ss:$24 sps:$4 sm:$0xff]  }
   0x7   :  { %1808 = vmatpush1.bf16.msra.mxu1 %v3143_v6  ;;  %v3161_v18 = vld [vmem:[%s4733_s1 + $0xc0] ss:$24 sps:$4 sm:$0xff]   ;;  %v3163_v20 = vld [vmem:[%s4733_s1 + $0xf4] ss:$24 sps:$4 sm:$0xff]   ;;  %v3167_v22 = vld [vmem:[%s4733_s1 + $0xf0] ss:$24 sps:$4 sm:$0xff]  }
   0x8   :  { %1849 = vmatpush1.bf16.msra.mxu0 %v3144_v7  ;;  %1809 = vmatprep.subr.bf16.mxu1 %v3145_v8  ;;  %v3162_v19 = vld [vmem:[%s4733_s1 + $0x3c0] ss:$24 sps:$4 sm:$0xff]   ;;  %v3165_v21 = vld [vmem:[%s4733_s1 + $0x3f4] ss:$24 sps:$4 sm:$0xff]   ;;  %v3168_v23 = vld [vmem:[%s4733_s1 + $0x3f0] ss:$24 sps:$4 sm:$0xff]  }
   0x9   :  { %1850 = vmatprep.subr.bf16.mxu0 %v3147_v9  ;;  %v3169_v24 = vld [vmem:[%s4733_s1 + $0x124] ss:$24 sps:$4 sm:$0xff]   ;;  %v3173_v26 = vld [vmem:[%s4733_s1 + $0x120] ss:$24 sps:$4 sm:$0xff]   ;;  %v3175_v28 = vld [vmem:[%s4733_s1 + $0x154] ss:$24 sps:$4 sm:$0xff]  }
   0xa   :  { %v3171_v25 = vld [vmem:[%s4733_s1 + $0x424] ss:$24 sps:$4 sm:$0xff]   ;;  %v3174_v27 = vld [vmem:[%s4733_s1 + $0x420] ss:$24 sps:$4 sm:$0xff]   ;;  %v3177_v29 = vld [vmem:[%s4733_s1 + $0x454] ss:$24 sps:$4 sm:$0xff]  }
   0xb   :  { %1810 = vmatpush1.bf16.msra.mxu1 %v3149_v10  ;;  %v3179_v30 = vld [vmem:[%s4733_s1 + $0x150] ss:$24 sps:$4 sm:$0xff]   ;;  %v3181_v32 = vld [vmem:[%s4733_s1 + $0x184] ss:$24 sps:$4 sm:$0xff]   ;;  %v3185_v34 = vld [vmem:[%s4733_s1 + $0x180] ss:$24 sps:$4 sm:$0xff]  }
   0xc   :  { %1851 = vmatpush1.bf16.msra.mxu0 %v3150_v11  ;;  %1811 = vmatprep.subr.bf16.mxu1 %v3151_v12  ;;  %v3180_v31 = vld [vmem:[%s4733_s1 + $0x450] ss:$24 sps:$4 sm:$0xff]   ;;  %v3183_v33 = vld [vmem:[%s4733_s1 + $0x484] ss:$24 sps:$4 sm:$0xff]   ;;  %v3186_v35 = vld [vmem:[%s4733_s1 + $0x480] ss:$24 sps:$4 sm:$0xff]  }
   0xd   :  { %1852 = vmatprep.subr.bf16.mxu0 %v3153_v13  ;;  %v3187_v36 = vld [vmem:[%s4733_s1 + $0x1b4] ss:$24 sps:$4 sm:$0xff]   ;;  %v3191_v38 = vld [vmem:[%s4733_s1 + $0x1b0] ss:$24 sps:$4 sm:$0xff]   ;;  %v3193_v40 = vld [vmem:[%s4733_s1 + $0x1e4] ss:$24 sps:$4 sm:$0xff]  }
   0xe   :  { %v3189_v37 = vld [vmem:[%s4733_s1 + $0x4b4] ss:$24 sps:$4 sm:$0xff]   ;;  %v3192_v39 = vld [vmem:[%s4733_s1 + $0x4b0] ss:$24 sps:$4 sm:$0xff]   ;;  %v3195_v41 = vld [vmem:[%s4733_s1 + $0x4e4] ss:$24 sps:$4 sm:$0xff]  }
   0xf   :  { %1812 = vmatpush1.bf16.msra.mxu1 %v3155_v14  ;;  %v3197_v42 = vld [vmem:[%s4733_s1 + $0x1e0] ss:$24 sps:$4 sm:$0xff]   ;;  %v3199_v44 = vld [vmem:[%s4733_s1 + $0x214] ss:$24 sps:$4 sm:$0xff]   ;;  %v3203_v49 = vld [vmem:[%s4733_s1 + $0x210] ss:$24 sps:$4 sm:$0xff]  }
  0x10   :  { %1853 = vmatpush1.bf16.msra.mxu0 %v3156_v15  ;;  %1813 = vmatprep.subr.bf16.mxu1 %v3157_v16  ;;  %v3198_v43 = vld [vmem:[%s4733_s1 + $0x4e0] ss:$24 sps:$4 sm:$0xff]   ;;  %v3201_v45 = vld [vmem:[%s4733_s1 + $0x514] ss:$24 sps:$4 sm:$0xff]   ;;  %v3204_v50 = vld [vmem:[%s4733_s1 + $0x510] ss:$24 sps:$4 sm:$0xff]  }
  0x11   :  { %1854 = vmatprep.subr.bf16.mxu0 %v3159_v17  ;;  %v21_v46 = vld [vmem:[%s4734_s0] sm:$0xff]  ;;  %v22_v48 = vld [vmem:[%s4734_s0 + $0x8] sm:$0xff]  ;;  %v3244_v11 = vld [vmem:[%s4733_s1 + $0x3c] ss:$24 sps:$4 sm:$0xff]  }
  0x12   :  { %v3790_v47 = vcombine.high %v21_v46, %v21_v46  ;;  %v3801_v51 = vcombine.high %v22_v48, %v22_v48  ;;  %v3205_v52 = vld [vmem:[%s4733_s1 + $0x244] ss:$24 sps:$4 sm:$0xff]   ;;  %v3209_v54 = vld [vmem:[%s4733_s1 + $0x240] ss:$24 sps:$4 sm:$0xff]   ;;  %v3211_v56 = vld [vmem:[%s4733_s1 + $0x274] ss:$24 sps:$4 sm:$0xff]   ;;  %v3859_v6 = vcombine.low %v21_v46, %v21_v46  ;;  %v3861_v7 = vcombine.low %v22_v48, %v22_v48 }
  0x13   :  { %1814 = vmatpush1.bf16.msra.mxu1 %v3161_v18  ;;  %v3207_v53 = vld [vmem:[%s4733_s1 + $0x544] ss:$24 sps:$4 sm:$0xff]   ;;  %v3210_v55 = vld [vmem:[%s4733_s1 + $0x540] ss:$24 sps:$4 sm:$0xff]   ;;  %v3213_v57 = vld [vmem:[%s4733_s1 + $0x574] ss:$24 sps:$4 sm:$0xff]  }
  0x14   :  { %1855 = vmatpush1.bf16.msra.mxu0 %v3162_v19  ;;  %1815 = vmatprep.subr.bf16.mxu1 %v3163_v20  ;;  %v3215_v58 = vld [vmem:[%s4733_s1 + $0x270] ss:$24 sps:$4 sm:$0xff]   ;;  %v3217_v60 = vld [vmem:[%s4733_s1 + $0x2a4] ss:$24 sps:$4 sm:$0xff]   ;;  %v3221_v62 = vld [vmem:[%s4733_s1 + $0x2a0] ss:$24 sps:$4 sm:$0xff]  }
  0x15   :  { %1856 = vmatprep.subr.bf16.mxu0 %v3165_v21  ;;  %1837 = vmatprep.mubr.bf16.mxu1 %v3790_v47  ;;  %v3216_v59 = vld [vmem:[%s4733_s1 + $0x570] ss:$24 sps:$4 sm:$0xff]   ;;  %v3219_v61 = vld [vmem:[%s4733_s1 + $0x5a4] ss:$24 sps:$4 sm:$0xff]   ;;  %v3222_v63 = vld [vmem:[%s4733_s1 + $0x5a0] ss:$24 sps:$4 sm:$0xff]  }
  0x16   :  { %1878 = vmatprep.mubr.bf16.mxu0 %v3801_v51  ;;  %v3223_v0 = vld [vmem:[%s4733_s1 + $0x2d4] ss:$24 sps:$4 sm:$0xff]   ;;  %v3227_v2 = vld [vmem:[%s4733_s1 + $0x2d0] ss:$24 sps:$4 sm:$0xff]   ;;  %v3233_v4 = vld [vmem:[%s4733_s1 + $0x604] ss:$24 sps:$4 sm:$0xff]  }
  0x17   :  { %1816 = vmatpush1.bf16.msra.mxu1 %v3167_v22  ;;  %v3225_v1 = vld [vmem:[%s4733_s1 + $0x5d4] ss:$24 sps:$4 sm:$0xff]   ;;  %v3228_v3 = vld [vmem:[%s4733_s1 + $0x5d0] ss:$24 sps:$4 sm:$0xff]   ;;  %v3231_v8 = vld [vmem:[%s4733_s1 + $0x600] ss:$24 sps:$4 sm:$0xff]  }
  0x18   :  { %1857 = vmatpush1.bf16.msra.mxu0 %v3168_v23  ;;  %1817 = vmatprep.subr.bf16.mxu1 %v3169_v24  ;;  %v3236_v5 = vld [vmem:[%s4733_s1 + $0xc] ss:$24 sps:$4 sm:$0xff]   ;;  %v3234_v9 = vld [vmem:[%s4733_s1 + $0x8] ss:$24 sps:$4 sm:$0xff]   ;;  %v3242_v13 = vld [vmem:[%s4733_s1 + $0x38] ss:$24 sps:$4 sm:$0xff]  }
  0x19   :  { %1858 = vmatprep.subr.bf16.mxu0 %v3171_v25  ;;  %v3241_v10 = vld [vmem:[%s4733_s1 + $0x634] ss:$24 sps:$4 sm:$0xff]   ;;  %v3239_v12 = vld [vmem:[%s4733_s1 + $0x630] ss:$24 sps:$4 sm:$0xff]   ;;  %v3247_v14 = vld [vmem:[%s4733_s1 + $0x664] ss:$24 sps:$4 sm:$0xff]  }
  0x1a   :  { %v3250_v15 = vld [vmem:[%s4733_s1 + $0x6c] ss:$24 sps:$4 sm:$0xff]   ;;  %v3245_v16 = vld [vmem:[%s4733_s1 + $0x660] ss:$24 sps:$4 sm:$0xff]   ;;  %v3256_v19 = vld [vmem:[%s4733_s1 + $0x9c] ss:$24 sps:$4 sm:$0xff]  }
  0x1b   :  { %1818 = vmatpush1.bf16.msra.mxu1 %v3173_v26  ;;  %v3248_v17 = vld [vmem:[%s4733_s1 + $0x68] ss:$24 sps:$4 sm:$0xff]   ;;  %v3253_v18 = vld [vmem:[%s4733_s1 + $0x694] ss:$24 sps:$4 sm:$0xff]   ;;  %v3254_v21 = vld [vmem:[%s4733_s1 + $0x98] ss:$24 sps:$4 sm:$0xff]  }
  0x1c   :  { %1859 = vmatpush1.bf16.msra.mxu0 %v3174_v27  ;;  %1819 = vmatprep.subr.bf16.mxu1 %v3175_v28  ;;  %v3251_v20 = vld [vmem:[%s4733_s1 + $0x690] ss:$24 sps:$4 sm:$0xff]   ;;  %v3259_v22 = vld [vmem:[%s4733_s1 + $0x6c4] ss:$24 sps:$4 sm:$0xff]   ;;  %v3257_v24 = vld [vmem:[%s4733_s1 + $0x6c0] ss:$24 sps:$4 sm:$0xff]  }
  0x1d   :  { %1860 = vmatprep.subr.bf16.mxu0 %v3177_v29  ;;  %v3262_v23 = vld [vmem:[%s4733_s1 + $0xcc] ss:$24 sps:$4 sm:$0xff]   ;;  %v3260_v25 = vld [vmem:[%s4733_s1 + $0xc8] ss:$24 sps:$4 sm:$0xff]   ;;  %v3268_v27 = vld [vmem:[%s4733_s1 + $0xfc] ss:$24 sps:$4 sm:$0xff]  }
  0x1e   :  { %v3265_v26 = vld [vmem:[%s4733_s1 + $0x6f4] ss:$24 sps:$4 sm:$0xff]   ;;  %v3263_v28 = vld [vmem:[%s4733_s1 + $0x6f0] ss:$24 sps:$4 sm:$0xff]  }
  0x1f   :  { %1820 = vmatpush1.bf16.msra.mxu1 %v3179_v30  ;;  %v3266_v29 = vld [vmem:[%s4733_s1 + $0xf8] ss:$24 sps:$4 sm:$0xff]   ;;  %v3271_v30 = vld [vmem:[%s4733_s1 + $0x724] ss:$24 sps:$4 sm:$0xff]  }
  0x20   :  { %1861 = vmatpush1.bf16.msra.mxu0 %v3180_v31  ;;  %1821 = vmatprep.subr.bf16.mxu1 %v3181_v32  ;;  %v3274_v31 = vld [vmem:[%s4733_s1 + $0x12c] ss:$24 sps:$4 sm:$0xff]   ;;  %v3941_v32 = vld [vmem:[%s4734_s0 + $0x10] sm:$0xff] }
  0x21   :  { %1862 = vmatprep.subr.bf16.mxu0 %v3183_v33  ;;  %v3269_v33 = vld [vmem:[%s4733_s1 + $0x720] ss:$24 sps:$4 sm:$0xff]   ;;  %v3287_v46 = vld [vmem:[%s4733_s1 + $0x7b0] ss:$24 sps:$4 sm:$0xff]  }
  0x22   :  { %v3290_v48 = vld [vmem:[%s4733_s1 + $0x1b8] ss:$24 sps:$4 sm:$0xff]  }
  0x23   :  { %1822 = vmatpush1.bf16.msra.mxu1 %v3185_v34  ;;  %v3948_v34 = vcombine.high %v3941_v32, %v3941_v32 }
  0x24   :  { %1863 = vmatpush1.bf16.msra.mxu0 %v3186_v35  ;;  %1823 = vmatprep.subr.bf16.mxu1 %v3187_v36  ;;  %v3272_v35 = vld [vmem:[%s4733_s1 + $0x128] ss:$24 sps:$4 sm:$0xff]   ;;  %v3277_v36 = vld [vmem:[%s4733_s1 + $0x754] ss:$24 sps:$4 sm:$0xff]  }
  0x25   :  { %1864 = vmatprep.subr.bf16.mxu0 %v3189_v37  ;;  %v3280_v37 = vld [vmem:[%s4733_s1 + $0x15c] ss:$24 sps:$4 sm:$0xff]  }
  0x27   :  { %1824 = vmatpush1.bf16.msra.mxu1 %v3191_v38  ;;  %v3275_v38 = vld [vmem:[%s4733_s1 + $0x750] ss:$24 sps:$4 sm:$0xff]  }
  0x28   :  { %1865 = vmatpush1.bf16.msra.mxu0 %v3192_v39  ;;  %1825 = vmatprep.subr.bf16.mxu1 %v3193_v40  ;;  %v3278_v39 = vld [vmem:[%s4733_s1 + $0x158] ss:$24 sps:$4 sm:$0xff]   ;;  %v3283_v40 = vld [vmem:[%s4733_s1 + $0x784] ss:$24 sps:$4 sm:$0xff]  }
  0x29   :  { %1866 = vmatprep.subr.bf16.mxu0 %v3195_v41  ;;  %v3286_v41 = vld [vmem:[%s4733_s1 + $0x18c] ss:$24 sps:$4 sm:$0xff]  }
  0x2b   :  { %1826 = vmatpush1.bf16.msra.mxu1 %v3197_v42  ;;  %v3281_v42 = vld [vmem:[%s4733_s1 + $0x780] ss:$24 sps:$4 sm:$0xff]  }
  0x2c   :  { %1867 = vmatpush1.bf16.msra.mxu0 %v3198_v43  ;;  %1827 = vmatprep.subr.bf16.mxu1 %v3199_v44  ;;  %v3284_v43 = vld [vmem:[%s4733_s1 + $0x188] ss:$24 sps:$4 sm:$0xff]   ;;  %v3289_v44 = vld [vmem:[%s4733_s1 + $0x7b4] ss:$24 sps:$4 sm:$0xff]  }
  0x2d   :  { %1868 = vmatprep.subr.bf16.mxu0 %v3201_v45  ;;  %v3292_v45 = vld [vmem:[%s4733_s1 + $0x1bc] ss:$24 sps:$4 sm:$0xff]  }
  0x2f   :  { %1828 = vmatpush1.bf16.msra.mxu1 %v3203_v49  ;;  %v3295_v49 = vld [vmem:[%s4733_s1 + $0x7e4] ss:$24 sps:$4 sm:$0xff]  }
  0x30   :  { %1869 = vmatpush1.bf16.msra.mxu0 %v3204_v50  ;;  %1829 = vmatprep.subr.bf16.mxu1 %v3205_v52  ;;  %v3298_v50 = vld [vmem:[%s4733_s1 + $0x1ec] ss:$24 sps:$4 sm:$0xff]   ;;  %v3293_v52 = vld [vmem:[%s4733_s1 + $0x7e0] ss:$24 sps:$4 sm:$0xff]  }
  0x31   :  { %1870 = vmatprep.subr.bf16.mxu0 %v3207_v53  ;;  %v3296_v53 = vld [vmem:[%s4733_s1 + $0x1e8] ss:$24 sps:$4 sm:$0xff]  }
  0x33   :  { %1830 = vmatpush1.bf16.msra.mxu1 %v3209_v54  ;;  %v3301_v54 = vld [vmem:[%s4733_s1 + $0x814] ss:$24 sps:$4 sm:$0xff]  }
  0x34   :  { %1871 = vmatpush1.bf16.msra.mxu0 %v3210_v55  ;;  %1831 = vmatprep.subr.bf16.mxu1 %v3211_v56  ;;  %v3304_v55 = vld [vmem:[%s4733_s1 + $0x21c] ss:$24 sps:$4 sm:$0xff]   ;;  %v3299_v56 = vld [vmem:[%s4733_s1 + $0x810] ss:$24 sps:$4 sm:$0xff]  }
  0x35   :  { %1872 = vmatprep.subr.bf16.mxu0 %v3213_v57  ;;  %v3302_v57 = vld [vmem:[%s4733_s1 + $0x218] ss:$24 sps:$4 sm:$0xff]  }
  0x37   :  { %1832 = vmatpush1.bf16.msra.mxu1 %v3215_v58  ;;  %v3307_v58 = vld [vmem:[%s4733_s1 + $0x844] ss:$24 sps:$4 sm:$0xff]  }
  0x38   :  { %1873 = vmatpush1.bf16.msra.mxu0 %v3216_v59  ;;  %1833 = vmatprep.subr.bf16.mxu1 %v3217_v60  ;;  %v3310_v59 = vld [vmem:[%s4733_s1 + $0x24c] ss:$24 sps:$4 sm:$0xff]   ;;  %v3305_v60 = vld [vmem:[%s4733_s1 + $0x840] ss:$24 sps:$4 sm:$0xff]  }
  0x39   :  { %1874 = vmatprep.subr.bf16.mxu0 %v3219_v61  ;;  %v3308_v61 = vld [vmem:[%s4733_s1 + $0x248] ss:$24 sps:$4 sm:$0xff]  }
  0x3b   :  { %1834 = vmatpush1.bf16.msra.mxu1 %v3221_v62  ;;  %v3313_v62 = vld [vmem:[%s4733_s1 + $0x874] ss:$24 sps:$4 sm:$0xff]  }
  0x3c   :  { %1875 = vmatpush1.bf16.msra.mxu0 %v3222_v63  ;;  %1835 = vmatprep.subr.bf16.mxu1 %v3223_v0  ;;  %v3316_v63 = vld [vmem:[%s4733_s1 + $0x27c] ss:$24 sps:$4 sm:$0xff]   ;;  %v3311_v0 = vld [vmem:[%s4733_s1 + $0x870] ss:$24 sps:$4 sm:$0xff]  }
  0x3d   :  { %1876 = vmatprep.subr.bf16.mxu0 %v3225_v1  ;;  %v3314_v1 = vld [vmem:[%s4733_s1 + $0x278] ss:$24 sps:$4 sm:$0xff]  }
  0x3f   :  { %1836 = vmatpush1.bf16.msra.mxu1 %v3227_v2  ;;  %v3319_v2 = vld [vmem:[%s4733_s1 + $0x8a4] ss:$24 sps:$4 sm:$0xff]  }
  0x40   :  { %1877 = vmatpush1.bf16.msra.mxu0 %v3228_v3  ;;  %1928 = vmatprep.subr.bf16.mxu1 %v3236_v5  ;;  %v3322_v3 = vld [vmem:[%s4733_s1 + $0x2ac] ss:$24 sps:$4 sm:$0xff]   ;;  %v3320_v5 = vld [vmem:[%s4733_s1 + $0x2a8] ss:$24 sps:$4 sm:$0xff]  }
  0x41   :  { %1887 = vmatprep.subr.bf16.mxu0 %v3233_v4  ;;  %v3317_v4 = vld [vmem:[%s4733_s1 + $0x8a0] ss:$24 sps:$4 sm:$0xff]  }
  0x42   :  { %1838 = vmatmul.mubr.bf16.vlgmr.msra.gmra.mrb[0].mxu1 %v3859_v6 }
  0x43   :  { %1879 = vmatmul.mubr.bf16.vlgmr.msra.gmra.mrb[0].mxu0 %v3861_v7  ;;  %1929 = vmatpush1.bf16.msra.mxu1 %v3234_v9  ;;  %v3328_v9 = vld [vmem:[%s4733_s1 + $0x2dc] ss:$24 sps:$4 sm:$0xff]  }
  0x44   :  { %1888 = vmatpush1.bf16.msra.mxu0 %v3231_v8  ;;  %1930 = vmatprep.subr.bf16.mxu1 %v3244_v11  ;;  %v3325_v8 = vld [vmem:[%s4733_s1 + $0x8d4] ss:$24 sps:$4 sm:$0xff]   ;;  %v3326_v11 = vld [vmem:[%s4733_s1 + $0x2d8] ss:$24 sps:$4 sm:$0xff]  }
  0x45   :  { %1889 = vmatprep.subr.bf16.mxu0 %v3241_v10  ;;  %1960 = vmatprep.mubr.bf16.mxu1 %v3790_v47  ;;  %v3323_v10 = vld [vmem:[%s4733_s1 + $0x8d0] ss:$24 sps:$4 sm:$0xff]  }
  0x46   :  { %1919 = vmatprep.mubr.bf16.mxu0 %v3948_v34 }
  0x47   :  { %1931 = vmatpush1.bf16.msra.mxu1 %v3242_v13  ;;  %v3336_v13 = vld [vmem:[%s4733_s1 + $0x14] ss:$24 sps:$4 sm:$0xff]  }
  0x48   :  { %1890 = vmatpush1.bf16.msra.mxu0 %v3239_v12  ;;  %1932 = vmatprep.subr.bf16.mxu1 %v3250_v15  ;;  %v3333_v12 = vld [vmem:[%s4733_s1 + $0x30c] ss:$24 sps:$4 sm:$0xff]   ;;  %v3331_v15 = vld [vmem:[%s4733_s1 + $0x308] ss:$24 sps:$4 sm:$0xff]  }
  0x49   :  { %1891 = vmatprep.subr.bf16.mxu0 %v3247_v14  ;;  %v4070_v14 = vcombine.low %v3941_v32, %v3941_v32  ;;  %v3363_v32 = vld [vmem:[%s4733_s1 + $0x3fc] ss:$24 sps:$4 sm:$0xff]  }
  0x4b   :  { %1933 = vmatpush1.bf16.msra.mxu1 %v3248_v17  ;;  %v3339_v17 = vld [vmem:[%s4733_s1 + $0x33c] ss:$24 sps:$4 sm:$0xff]  }
  0x4c   :  { %1892 = vmatpush1.bf16.msra.mxu0 %v3245_v16  ;;  %1934 = vmatprep.subr.bf16.mxu1 %v3256_v19  ;;  %v3334_v16 = vld [vmem:[%s4733_s1 + $0x10] ss:$24 sps:$4 sm:$0xff]  }
  0x4d   :  { %1893 = vmatprep.subr.bf16.mxu0 %v3253_v18  ;;  %v3342_v18 = vld [vmem:[%s4733_s1 + $0x44] ss:$24 sps:$4 sm:$0xff]   ;;  %v3337_v19 = vld [vmem:[%s4733_s1 + $0x338] ss:$24 sps:$4 sm:$0xff]  }
  0x4f   :  { %1935 = vmatpush1.bf16.msra.mxu1 %v3254_v21  ;;  %v3345_v21 = vld [vmem:[%s4733_s1 + $0x36c] ss:$24 sps:$4 sm:$0xff]  }
  0x50   :  { %1894 = vmatpush1.bf16.msra.mxu0 %v3251_v20  ;;  %1936 = vmatprep.subr.bf16.mxu1 %v3262_v23  ;;  %v3340_v20 = vld [vmem:[%s4733_s1 + $0x40] ss:$24 sps:$4 sm:$0xff]  }
  0x51   :  { %1895 = vmatprep.subr.bf16.mxu0 %v3259_v22  ;;  %v3348_v22 = vld [vmem:[%s4733_s1 + $0x74] ss:$24 sps:$4 sm:$0xff]   ;;  %v3343_v23 = vld [vmem:[%s4733_s1 + $0x368] ss:$24 sps:$4 sm:$0xff]  }
  0x53   :  { %1937 = vmatpush1.bf16.msra.mxu1 %v3260_v25  ;;  %v3351_v25 = vld [vmem:[%s4733_s1 + $0x39c] ss:$24 sps:$4 sm:$0xff]  }
  0x54   :  { %1896 = vmatpush1.bf16.msra.mxu0 %v3257_v24  ;;  %1938 = vmatprep.subr.bf16.mxu1 %v3268_v27  ;;  %v3346_v24 = vld [vmem:[%s4733_s1 + $0x70] ss:$24 sps:$4 sm:$0xff]   ;;  %v3352_v27 = vld [vmem:[%s4733_s1 + $0xa0] ss:$24 sps:$4 sm:$0xff]  }
  0x55   :  { %1897 = vmatprep.subr.bf16.mxu0 %v3265_v26  ;;  %v3349_v26 = vld [vmem:[%s4733_s1 + $0x398] ss:$24 sps:$4 sm:$0xff]  }
  0x57   :  { %1939 = vmatpush1.bf16.msra.mxu1 %v3266_v29  ;;  %v3360_v29 = vld [vmem:[%s4733_s1 + $0xd4] ss:$24 sps:$4 sm:$0xff]  }
  0x58   :  { %1898 = vmatpush1.bf16.msra.mxu0 %v3263_v28  ;;  %1940 = vmatprep.subr.bf16.mxu1 %v3274_v31  ;;  %v3357_v28 = vld [vmem:[%s4733_s1 + $0x3cc] ss:$24 sps:$4 sm:$0xff]   ;;  %v3358_v31 = vld [vmem:[%s4733_s1 + $0xd0] ss:$24 sps:$4 sm:$0xff]  }
  0x59   :  { %1899 = vmatprep.subr.bf16.mxu0 %v3271_v30  ;;  %v3355_v30 = vld [vmem:[%s4733_s1 + $0x3c8] ss:$24 sps:$4 sm:$0xff]  }
  0x5b   :  { %1941 = vmatpush1.bf16.msra.mxu1 %v3272_v35  ;;  %v3361_v35 = vld [vmem:[%s4733_s1 + $0x3f8] ss:$24 sps:$4 sm:$0xff]  }
  0x5c   :  { %1900 = vmatpush1.bf16.msra.mxu0 %v3269_v33  ;;  %1942 = vmatprep.subr.bf16.mxu1 %v3280_v37  ;;  %v3366_v33 = vld [vmem:[%s4733_s1 + $0x104] ss:$24 sps:$4 sm:$0xff]  }
  0x5d   :  { %1901 = vmatprep.subr.bf16.mxu0 %v3277_v36  ;;  %v3364_v36 = vld [vmem:[%s4733_s1 + $0x100] ss:$24 sps:$4 sm:$0xff]   ;;  %v3369_v37 = vld [vmem:[%s4733_s1 + $0x42c] ss:$24 sps:$4 sm:$0xff]  }
  0x5f   :  { %1943 = vmatpush1.bf16.msra.mxu1 %v3278_v39  ;;  %v3367_v39 = vld [vmem:[%s4733_s1 + $0x428] ss:$24 sps:$4 sm:$0xff]  }
  0x60   :  { %1902 = vmatpush1.bf16.msra.mxu0 %v3275_v38  ;;  %1944 = vmatprep.subr.bf16.mxu1 %v3286_v41  ;;  %v3372_v38 = vld [vmem:[%s4733_s1 + $0x134] ss:$24 sps:$4 sm:$0xff]  }
  0x61   :  { %1903 = vmatprep.subr.bf16.mxu0 %v3283_v40  ;;  %v3370_v40 = vld [vmem:[%s4733_s1 + $0x130] ss:$24 sps:$4 sm:$0xff]   ;;  %v3375_v41 = vld [vmem:[%s4733_s1 + $0x45c] ss:$24 sps:$4 sm:$0xff]  }
  0x63   :  { %1945 = vmatpush1.bf16.msra.mxu1 %v3284_v43  ;;  %v3373_v43 = vld [vmem:[%s4733_s1 + $0x458] ss:$24 sps:$4 sm:$0xff]  }
  0x64   :  { %1904 = vmatpush1.bf16.msra.mxu0 %v3281_v42  ;;  %1946 = vmatprep.subr.bf16.mxu1 %v3292_v45  ;;  %v3378_v42 = vld [vmem:[%s4733_s1 + $0x164] ss:$24 sps:$4 sm:$0xff]  }
  0x65   :  { %1905 = vmatprep.subr.bf16.mxu0 %v3289_v44  ;;  %v3376_v44 = vld [vmem:[%s4733_s1 + $0x160] ss:$24 sps:$4 sm:$0xff]   ;;  %v3381_v45 = vld [vmem:[%s4733_s1 + $0x48c] ss:$24 sps:$4 sm:$0xff]  }
  0x67   :  { %1947 = vmatpush1.bf16.msra.mxu1 %v3290_v48  ;;  %v3379_v48 = vld [vmem:[%s4733_s1 + $0x488] ss:$24 sps:$4 sm:$0xff]  }
  0x68   :  { %1906 = vmatpush1.bf16.msra.mxu0 %v3287_v46  ;;  %1948 = vmatprep.subr.bf16.mxu1 %v3298_v50  ;;  %v3384_v46 = vld [vmem:[%s4733_s1 + $0x194] ss:$24 sps:$4 sm:$0xff]  }
  0x69   :  { %1907 = vmatprep.subr.bf16.mxu0 %v3295_v49  ;;  %v3382_v49 = vld [vmem:[%s4733_s1 + $0x190] ss:$24 sps:$4 sm:$0xff]   ;;  %v3387_v50 = vld [vmem:[%s4733_s1 + $0x4bc] ss:$24 sps:$4 sm:$0xff]  }
  0x6b   :  { %1949 = vmatpush1.bf16.msra.mxu1 %v3296_v53  ;;  %v3385_v53 = vld [vmem:[%s4733_s1 + $0x4b8] ss:$24 sps:$4 sm:$0xff]  }
  0x6c   :  { %1908 = vmatpush1.bf16.msra.mxu0 %v3293_v52  ;;  %1950 = vmatprep.subr.bf16.mxu1 %v3304_v55  ;;  %v3390_v52 = vld [vmem:[%s4733_s1 + $0x1c4] ss:$24 sps:$4 sm:$0xff]  }
  0x6d   :  { %1909 = vmatprep.subr.bf16.mxu0 %v3301_v54  ;;  %v3388_v54 = vld [vmem:[%s4733_s1 + $0x1c0] ss:$24 sps:$4 sm:$0xff]   ;;  %v3393_v55 = vld [vmem:[%s4733_s1 + $0x4ec] ss:$24 sps:$4 sm:$0xff]  }
  0x6f   :  { %1951 = vmatpush1.bf16.msra.mxu1 %v3302_v57  ;;  %v3391_v57 = vld [vmem:[%s4733_s1 + $0x4e8] ss:$24 sps:$4 sm:$0xff]  }
  0x70   :  { %1910 = vmatpush1.bf16.msra.mxu0 %v3299_v56  ;;  %1952 = vmatprep.subr.bf16.mxu1 %v3310_v59  ;;  %v3396_v56 = vld [vmem:[%s4733_s1 + $0x1f4] ss:$24 sps:$4 sm:$0xff]  }
  0x71   :  { %1911 = vmatprep.subr.bf16.mxu0 %v3307_v58  ;;  %v3394_v58 = vld [vmem:[%s4733_s1 + $0x1f0] ss:$24 sps:$4 sm:$0xff]   ;;  %v3399_v59 = vld [vmem:[%s4733_s1 + $0x51c] ss:$24 sps:$4 sm:$0xff]  }
  0x73   :  { %1953 = vmatpush1.bf16.msra.mxu1 %v3308_v61  ;;  %v3397_v61 = vld [vmem:[%s4733_s1 + $0x518] ss:$24 sps:$4 sm:$0xff]  }
  0x74   :  { %1912 = vmatpush1.bf16.msra.mxu0 %v3305_v60  ;;  %1954 = vmatprep.subr.bf16.mxu1 %v3316_v63  ;;  %v3402_v60 = vld [vmem:[%s4733_s1 + $0x224] ss:$24 sps:$4 sm:$0xff]  }
  0x75   :  { %1913 = vmatprep.subr.bf16.mxu0 %v3313_v62  ;;  %v3400_v62 = vld [vmem:[%s4733_s1 + $0x220] ss:$24 sps:$4 sm:$0xff]   ;;  %v3405_v63 = vld [vmem:[%s4733_s1 + $0x54c] ss:$24 sps:$4 sm:$0xff]  }
  0x77   :  { %1955 = vmatpush1.bf16.msra.mxu1 %v3314_v1  ;;  %v3403_v1 = vld [vmem:[%s4733_s1 + $0x548] ss:$24 sps:$4 sm:$0xff]  }
  0x78   :  { %1914 = vmatpush1.bf16.msra.mxu0 %v3311_v0  ;;  %1956 = vmatprep.subr.bf16.mxu1 %v3322_v3  ;;  %v3408_v0 = vld [vmem:[%s4733_s1 + $0x254] ss:$24 sps:$4 sm:$0xff]  }
  0x79   :  { %1915 = vmatprep.subr.bf16.mxu0 %v3319_v2  ;;  %v3406_v2 = vld [vmem:[%s4733_s1 + $0x250] ss:$24 sps:$4 sm:$0xff]   ;;  %v3411_v3 = vld [vmem:[%s4733_s1 + $0x57c] ss:$24 sps:$4 sm:$0xff]  }
  0x7b   :  { %1957 = vmatpush1.bf16.msra.mxu1 %v3320_v5  ;;  %v3409_v5 = vld [vmem:[%s4733_s1 + $0x578] ss:$24 sps:$4 sm:$0xff]  }
  0x7c   :  { %1916 = vmatpush1.bf16.msra.mxu0 %v3317_v4  ;;  %1958 = vmatprep.subr.bf16.mxu1 %v3328_v9  ;;  %v3414_v4 = vld [vmem:[%s4733_s1 + $0x284] ss:$24 sps:$4 sm:$0xff]  }
  0x7d   :  { %1917 = vmatprep.subr.bf16.mxu0 %v3325_v8  ;;  %v3412_v8 = vld [vmem:[%s4733_s1 + $0x280] ss:$24 sps:$4 sm:$0xff]   ;;  %v3417_v9 = vld [vmem:[%s4733_s1 + $0x5ac] ss:$24 sps:$4 sm:$0xff]  }
  0x7f   :  { %1959 = vmatpush1.bf16.msra.mxu1 %v3326_v11  ;;  %v3415_v11 = vld [vmem:[%s4733_s1 + $0x5a8] ss:$24 sps:$4 sm:$0xff]  }
  0x80   :  { %1918 = vmatpush1.bf16.msra.mxu0 %v3323_v10  ;;  %1969 = vmatprep.subr.bf16.mxu1 %v3333_v12  ;;  %v3420_v10 = vld [vmem:[%s4733_s1 + $0x2b4] ss:$24 sps:$4 sm:$0xff]   ;;  %v3418_v12 = vld [vmem:[%s4733_s1 + $0x2b0] ss:$24 sps:$4 sm:$0xff]  }
  0x81   :  { %2051 = vmatprep.subr.bf16.mxu0 %v3336_v13  ;;  %v3423_v13 = vld [vmem:[%s4733_s1 + $0x5dc] ss:$24 sps:$4 sm:$0xff]  }
  0x82   :  { %1961 = vmatmul.mubr.bf16.vlgmr.msra.gmra.mrb[4].mxu1 %v3859_v6 }
  0x83   :  { %1920 = vmatmul.mubr.bf16.vlgmr.msra.gmra.mrb[0].mxu0 %v4070_v14  ;;  %1970 = vmatpush1.bf16.msra.mxu1 %v3331_v15  ;;  %v3426_v15 = vld [vmem:[%s4733_s1 + $0x2e4] ss:$24 sps:$4 sm:$0xff]  }
  0x84   :  { %2052 = vmatpush1.bf16.msra.mxu0 %v3334_v16  ;;  %1971 = vmatprep.subr.bf16.mxu1 %v3339_v17  ;;  %v3421_v16 = vld [vmem:[%s4733_s1 + $0x5d8] ss:$24 sps:$4 sm:$0xff]  }
  0x85   :  { %2053 = vmatprep.subr.bf16.mxu0 %v3342_v18  ;;  %2001 = vmatprep.mubr.bf16.mxu1 %v3801_v51  ;;  %v3424_v17 = vld [vmem:[%s4733_s1 + $0x2e0] ss:$24 sps:$4 sm:$0xff]   ;;  %v3429_v18 = vld [vmem:[%s4733_s1 + $0x60c] ss:$24 sps:$4 sm:$0xff]  }
  0x86   :  { %2083 = vmatprep.mubr.bf16.mxu0 %v3790_v47  ;;  %v3354_v47 = vld [vmem:[%s4733_s1 + $0xa4] ss:$24 sps:$4 sm:$0xff]  }
  0x87   :  { %1972 = vmatpush1.bf16.msra.mxu1 %v3337_v19  ;;  %v3432_v19 = vld [vmem:[%s4733_s1 + $0x314] ss:$24 sps:$4 sm:$0xff]  }
  0x88   :  { %2054 = vmatpush1.bf16.msra.mxu0 %v3340_v20  ;;  %1973 = vmatprep.subr.bf16.mxu1 %v3345_v21  ;;  %v3427_v20 = vld [vmem:[%s4733_s1 + $0x608] ss:$24 sps:$4 sm:$0xff]  }
  0x89   :  { %2055 = vmatprep.subr.bf16.mxu0 %v3348_v22  ;;  %v3430_v21 = vld [vmem:[%s4733_s1 + $0x310] ss:$24 sps:$4 sm:$0xff]   ;;  %v3435_v22 = vld [vmem:[%s4733_s1 + $0x63c] ss:$24 sps:$4 sm:$0xff]  }
  0x8b   :  { %1974 = vmatpush1.bf16.msra.mxu1 %v3343_v23  ;;  %v3438_v23 = vld [vmem:[%s4733_s1 + $0x344] ss:$24 sps:$4 sm:$0xff]  }
  0x8c   :  { %2056 = vmatpush1.bf16.msra.mxu0 %v3346_v24  ;;  %1975 = vmatprep.subr.bf16.mxu1 %v3351_v25  ;;  %v3433_v24 = vld [vmem:[%s4733_s1 + $0x638] ss:$24 sps:$4 sm:$0xff]  }
  0x8d   :  { %2057 = vmatprep.subr.bf16.mxu0 %v3354_v47  ;;  %v3436_v25 = vld [vmem:[%s4733_s1 + $0x340] ss:$24 sps:$4 sm:$0xff]   ;;  %v3441_v47 = vld [vmem:[%s4733_s1 + $0x66c] ss:$24 sps:$4 sm:$0xff]  }
  0x8f   :  { %1976 = vmatpush1.bf16.msra.mxu1 %v3349_v26  ;;  %v3444_v26 = vld [vmem:[%s4733_s1 + $0x374] ss:$24 sps:$4 sm:$0xff]  }
  0x90   :  { %2058 = vmatpush1.bf16.msra.mxu0 %v3352_v27  ;;  %1977 = vmatprep.subr.bf16.mxu1 %v3357_v28  ;;  %v3442_v27 = vld [vmem:[%s4733_s1 + $0x370] ss:$24 sps:$4 sm:$0xff]   ;;  %v3447_v28 = vld [vmem:[%s4733_s1 + $0x69c] ss:$24 sps:$4 sm:$0xff]  }
  0x91   :  { %2059 = vmatprep.subr.bf16.mxu0 %v3360_v29  ;;  %v3450_v29 = vld [vmem:[%s4733_s1 + $0x3a4] ss:$24 sps:$4 sm:$0xff]  }
  0x93   :  { %1978 = vmatpush1.bf16.msra.mxu1 %v3355_v30  ;;  %v3448_v30 = vld [vmem:[%s4733_s1 + $0x3a0] ss:$24 sps:$4 sm:$0xff]  }
  0x94   :  { %2060 = vmatpush1.bf16.msra.mxu0 %v3358_v31  ;;  %1979 = vmatprep.subr.bf16.mxu1 %v3363_v32  ;;  %v3453_v31 = vld [vmem:[%s4733_s1 + $0x6cc] ss:$24 sps:$4 sm:$0xff]  }
  0x95   :  { %2061 = vmatprep.subr.bf16.mxu0 %v3366_v33  ;;  %v3456_v32 = vld [vmem:[%s4733_s1 + $0x3d4] ss:$24 sps:$4 sm:$0xff]   ;;  %v3451_v33 = vld [vmem:[%s4733_s1 + $0x6c8] ss:$24 sps:$4 sm:$0xff]  }
  0x97   :  { %1980 = vmatpush1.bf16.msra.mxu1 %v3361_v35  ;;  %v3454_v35 = vld [vmem:[%s4733_s1 + $0x3d0] ss:$24 sps:$4 sm:$0xff]  }
  0x98   :  { %2062 = vmatpush1.bf16.msra.mxu0 %v3364_v36  ;;  %1981 = vmatprep.subr.bf16.mxu1 %v3369_v37  ;;  %v3459_v36 = vld [vmem:[%s4733_s1 + $0x6fc] ss:$24 sps:$4 sm:$0xff]  }
  0x99   :  { %2063 = vmatprep.subr.bf16.mxu0 %v3372_v38  ;;  %v3462_v37 = vld [vmem:[%s4733_s1 + $0x404] ss:$24 sps:$4 sm:$0xff]   ;;  %v3457_v38 = vld [vmem:[%s4733_s1 + $0x6f8] ss:$24 sps:$4 sm:$0xff]  }
  0x9b   :  { %1982 = vmatpush1.bf16.msra.mxu1 %v3367_v39  ;;  %v3460_v39 = vld [vmem:[%s4733_s1 + $0x400] ss:$24 sps:$4 sm:$0xff]  }
  0x9c   :  { %2064 = vmatpush1.bf16.msra.mxu0 %v3370_v40  ;;  %1983 = vmatprep.subr.bf16.mxu1 %v3375_v41  ;;  %v3465_v40 = vld [vmem:[%s4733_s1 + $0x72c] ss:$24 sps:$4 sm:$0xff]  }
  0x9d   :  { %2065 = vmatprep.subr.bf16.mxu0 %v3378_v42  ;;  %v3468_v41 = vld [vmem:[%s4733_s1 + $0x434] ss:$24 sps:$4 sm:$0xff]   ;;  %v3463_v42 = vld [vmem:[%s4733_s1 + $0x728] ss:$24 sps:$4 sm:$0xff]  }
  0x9f   :  { %1984 = vmatpush1.bf16.msra.mxu1 %v3373_v43  ;;  %v3466_v43 = vld [vmem:[%s4733_s1 + $0x430] ss:$24 sps:$4 sm:$0xff]  }
  0xa0   :  { %2066 = vmatpush1.bf16.msra.mxu0 %v3376_v44  ;;  %1985 = vmatprep.subr.bf16.mxu1 %v3381_v45  ;;  %v3471_v44 = vld [vmem:[%s4733_s1 + $0x75c] ss:$24 sps:$4 sm:$0xff]  }
  0xa1   :  { %2067 = vmatprep.subr.bf16.mxu0 %v3384_v46  ;;  %v3474_v45 = vld [vmem:[%s4733_s1 + $0x464] ss:$24 sps:$4 sm:$0xff]   ;;  %v3469_v46 = vld [vmem:[%s4733_s1 + $0x758] ss:$24 sps:$4 sm:$0xff]  }
  0xa3   :  { %1986 = vmatpush1.bf16.msra.mxu1 %v3379_v48  ;;  %v3472_v48 = vld [vmem:[%s4733_s1 + $0x460] ss:$24 sps:$4 sm:$0xff]  }
  0xa4   :  { %2068 = vmatpush1.bf16.msra.mxu0 %v3382_v49  ;;  %1987 = vmatprep.subr.bf16.mxu1 %v3387_v50  ;;  %v3477_v49 = vld [vmem:[%s4733_s1 + $0x78c] ss:$24 sps:$4 sm:$0xff]  }
  0xa5   :  { %2069 = vmatprep.subr.bf16.mxu0 %v3390_v52  ;;  %v3480_v50 = vld [vmem:[%s4733_s1 + $0x494] ss:$24 sps:$4 sm:$0xff]   ;;  %v3475_v52 = vld [vmem:[%s4733_s1 + $0x788] ss:$24 sps:$4 sm:$0xff]  }
  0xa7   :  { %1988 = vmatpush1.bf16.msra.mxu1 %v3385_v53  ;;  %v3478_v53 = vld [vmem:[%s4733_s1 + $0x490] ss:$24 sps:$4 sm:$0xff]  }
  0xa8   :  { %2070 = vmatpush1.bf16.msra.mxu0 %v3388_v54  ;;  %1989 = vmatprep.subr.bf16.mxu1 %v3393_v55  ;;  %v3483_v54 = vld [vmem:[%s4733_s1 + $0x7bc] ss:$24 sps:$4 sm:$0xff]  }
  0xa9   :  { %2071 = vmatprep.subr.bf16.mxu0 %v3396_v56  ;;  %v3486_v55 = vld [vmem:[%s4733_s1 + $0x4c4] ss:$24 sps:$4 sm:$0xff]   ;;  %v3481_v56 = vld [vmem:[%s4733_s1 + $0x7b8] ss:$24 sps:$4 sm:$0xff]  }
  0xab   :  { %1990 = vmatpush1.bf16.msra.mxu1 %v3391_v57  ;;  %v3484_v57 = vld [vmem:[%s4733_s1 + $0x4c0] ss:$24 sps:$4 sm:$0xff]  }
  0xac   :  { %2072 = vmatpush1.bf16.msra.mxu0 %v3394_v58  ;;  %1991 = vmatprep.subr.bf16.mxu1 %v3399_v59  ;;  %v3489_v58 = vld [vmem:[%s4733_s1 + $0x7ec] ss:$24 sps:$4 sm:$0xff]  }
  0xad   :  { %2073 = vmatprep.subr.bf16.mxu0 %v3402_v60  ;;  %v3492_v59 = vld [vmem:[%s4733_s1 + $0x4f4] ss:$24 sps:$4 sm:$0xff]   ;;  %v3487_v60 = vld [vmem:[%s4733_s1 + $0x7e8] ss:$24 sps:$4 sm:$0xff]  }
  0xaf   :  { %1992 = vmatpush1.bf16.msra.mxu1 %v3397_v61  ;;  %v3490_v61 = vld [vmem:[%s4733_s1 + $0x4f0] ss:$24 sps:$4 sm:$0xff]  }
  0xb0   :  { %2074 = vmatpush1.bf16.msra.mxu0 %v3400_v62  ;;  %1993 = vmatprep.subr.bf16.mxu1 %v3405_v63  ;;  %v3495_v62 = vld [vmem:[%s4733_s1 + $0x81c] ss:$24 sps:$4 sm:$0xff]  }
  0xb1   :  { %2075 = vmatprep.subr.bf16.mxu0 %v3408_v0  ;;  %v3498_v63 = vld [vmem:[%s4733_s1 + $0x524] ss:$24 sps:$4 sm:$0xff]   ;;  %v3493_v0 = vld [vmem:[%s4733_s1 + $0x818] ss:$24 sps:$4 sm:$0xff]  }
  0xb3   :  { %1994 = vmatpush1.bf16.msra.mxu1 %v3403_v1  ;;  %v3496_v1 = vld [vmem:[%s4733_s1 + $0x520] ss:$24 sps:$4 sm:$0xff]  }
  0xb4   :  { %2076 = vmatpush1.bf16.msra.mxu0 %v3406_v2  ;;  %1995 = vmatprep.subr.bf16.mxu1 %v3411_v3  ;;  %v3501_v2 = vld [vmem:[%s4733_s1 + $0x84c] ss:$24 sps:$4 sm:$0xff]  }
  0xb5   :  { %2077 = vmatprep.subr.bf16.mxu0 %v3414_v4  ;;  %v3504_v3 = vld [vmem:[%s4733_s1 + $0x554] ss:$24 sps:$4 sm:$0xff]   ;;  %v3499_v4 = vld [vmem:[%s4733_s1 + $0x848] ss:$24 sps:$4 sm:$0xff]  }
  0xb7   :  { %1996 = vmatpush1.bf16.msra.mxu1 %v3409_v5  ;;  %v3502_v5 = vld [vmem:[%s4733_s1 + $0x550] ss:$24 sps:$4 sm:$0xff]  }
  0xb8   :  { %2078 = vmatpush1.bf16.msra.mxu0 %v3412_v8  ;;  %1997 = vmatprep.subr.bf16.mxu1 %v3417_v9  ;;  %v3507_v8 = vld [vmem:[%s4733_s1 + $0x87c] ss:$24 sps:$4 sm:$0xff]  }
  0xb9   :  { %2079 = vmatprep.subr.bf16.mxu0 %v3420_v10  ;;  %v3510_v9 = vld [vmem:[%s4733_s1 + $0x584] ss:$24 sps:$4 sm:$0xff]   ;;  %v3505_v10 = vld [vmem:[%s4733_s1 + $0x878] ss:$24 sps:$4 sm:$0xff]  }
  0xbb   :  { %1998 = vmatpush1.bf16.msra.mxu1 %v3415_v11  ;;  %v3508_v11 = vld [vmem:[%s4733_s1 + $0x580] ss:$24 sps:$4 sm:$0xff]  }
  0xbc   :  { %2080 = vmatpush1.bf16.msra.mxu0 %v3418_v12  ;;  %1999 = vmatprep.subr.bf16.mxu1 %v3423_v13  ;;  %v3513_v12 = vld [vmem:[%s4733_s1 + $0x8ac] ss:$24 sps:$4 sm:$0xff]  }
  0xbd   :  { %2081 = vmatprep.subr.bf16.mxu0 %v3426_v15  ;;  %v3516_v13 = vld [vmem:[%s4733_s1 + $0x5b4] ss:$24 sps:$4 sm:$0xff]   ;;  %v3511_v15 = vld [vmem:[%s4733_s1 + $0x8a8] ss:$24 sps:$4 sm:$0xff]  }
  0xbf   :  { %2000 = vmatpush1.bf16.msra.mxu1 %v3421_v16  ;;  %v3514_v16 = vld [vmem:[%s4733_s1 + $0x5b0] ss:$24 sps:$4 sm:$0xff]  }
  0xc0   :  { %2082 = vmatpush1.bf16.msra.mxu0 %v3424_v17  ;;  %2010 = vmatprep.subr.bf16.mxu1 %v3429_v18  ;;  %v3519_v17 = vld [vmem:[%s4733_s1 + $0x8dc] ss:$24 sps:$4 sm:$0xff]  }
  0xc1   :  { %2092 = vmatprep.subr.bf16.mxu0 %v3432_v19  ;;  %v3522_v18 = vld [vmem:[%s4733_s1 + $0x5e4] ss:$24 sps:$4 sm:$0xff]   ;;  %v3517_v19 = vld [vmem:[%s4733_s1 + $0x8d8] ss:$24 sps:$4 sm:$0xff]  }
  0xc2   :  { %2002 = vmatmul.mubr.bf16.vlgmr.msra.gmra.mrb[4].mxu1 %v3861_v7 }
  0xc3   :  { %2084 = vmatmul.mubr.bf16.vlgmr.msra.gmra.mrb[4].mxu0 %v3859_v6  ;;  %2011 = vmatpush1.bf16.msra.mxu1 %v3427_v20  ;;  %v3439_v6 = vld [vmem:[%s4733_s1 + $0x668] ss:$24 sps:$4 sm:$0xff]  }
  0xc4   :  { %2093 = vmatpush1.bf16.msra.mxu0 %v3430_v21  ;;  %2012 = vmatprep.subr.bf16.mxu1 %v3435_v22  ;;  %v3520_v20 = vld [vmem:[%s4733_s1 + $0x5e0] ss:$24 sps:$4 sm:$0xff]   ;;  %v3525_v21 = vld [vmem:[%s4733_s1 + $0x614] ss:$24 sps:$4 sm:$0xff]  }
  0xc5   :  { %2094 = vmatprep.subr.bf16.mxu0 %v3438_v23  ;;  %2042 = vmatprep.mubr.bf16.mxu1 %v3948_v34  ;;  %v3568_v22 = vld [vmem:[%s4735_s3 + $0x40] sm:$0xff]   ;;  %v3523_v23 = vld [vmem:[%s4733_s1 + $0x610] ss:$24 sps:$4 sm:$0xff]  }
  0xc6   :  { %2124 = vmatprep.mubr.bf16.mxu0 %v3801_v51  ;;  %v3445_v51 = vld [vmem:[%s4733_s1 + $0x698] ss:$24 sps:$4 sm:$0xff]  }
  0xc7   :  { %2013 = vmatpush1.bf16.msra.mxu1 %v3433_v24  ;;  %v3569_v24 = vld [vmem:[%s4735_s3] sm:$0xff]  }
  0xc8   :  { %2095 = vmatpush1.bf16.msra.mxu0 %v3436_v25  ;;  %2014 = vmatprep.subr.bf16.mxu1 %v3441_v47  ;;  %v3528_v25 = vld [vmem:[%s4733_s1 + $0x644] ss:$24 sps:$4 sm:$0xff]   ;;  %v3573_v47 = vld [vmem:[%s4735_s3 + $0x48] sm:$0xff]  }
  0xc9   :  { %2096 = vmatprep.subr.bf16.mxu0 %v3444_v26  ;;  %v3526_v26 = vld [vmem:[%s4733_s1 + $0x640] ss:$24 sps:$4 sm:$0xff]  }
  0xcb   :  { %2015 = vmatpush1.bf16.msra.mxu1 %v3439_v6  ;;  %v3574_v6 = vld [vmem:[%s4735_s3 + $0x8] sm:$0xff]  }
  0xcc   :  { %2097 = vmatpush1.bf16.msra.mxu0 %v3442_v27  ;;  %2016 = vmatprep.subr.bf16.mxu1 %v3447_v28  ;;  %v3531_v27 = vld [vmem:[%s4733_s1 + $0x674] ss:$24 sps:$4 sm:$0xff]   ;;  %v3529_v28 = vld [vmem:[%s4733_s1 + $0x670] ss:$24 sps:$4 sm:$0xff]  }
  0xcd   :  { %2098 = vmatprep.subr.bf16.mxu0 %v3450_v29  ;;  %v3576_v29 = vld [vmem:[%s4735_s3 + $0x10] sm:$0xff]  }
  0xcf   :  { %2017 = vmatpush1.bf16.msra.mxu1 %v3445_v51  ;;  %v3534_v51 = vld [vmem:[%s4733_s1 + $0x6a4] ss:$24 sps:$4 sm:$0xff]  }
  0xd0   :  { %2099 = vmatpush1.bf16.msra.mxu0 %v3448_v30  ;;  %2018 = vmatprep.subr.bf16.mxu1 %v3453_v31  ;;  %v3532_v30 = vld [vmem:[%s4733_s1 + $0x6a0] ss:$24 sps:$4 sm:$0xff]  }
  0xd1   :  { %2100 = vmatprep.subr.bf16.mxu0 %v3456_v32  ;;  %v3578_v31 = vld [vmem:[%s4735_s3 + $0x18] sm:$0xff]   ;;  %v3537_v32 = vld [vmem:[%s4733_s1 + $0x6d4] ss:$24 sps:$4 sm:$0xff]  }
  0xd3   :  { %2019 = vmatpush1.bf16.msra.mxu1 %v3451_v33  ;;  %v3579_v33 = vld [vmem:[%s4735_s3 + $0x60] sm:$0xff]  }
  0xd4   :  { %2101 = vmatpush1.bf16.msra.mxu0 %v3454_v35  ;;  %2020 = vmatprep.subr.bf16.mxu1 %v3459_v36  ;;  %v3535_v35 = vld [vmem:[%s4733_s1 + $0x6d0] ss:$24 sps:$4 sm:$0xff]   ;;  %v3580_v36 = vld [vmem:[%s4735_s3 + $0x20] sm:$0xff]  }
  0xd5   :  { %2102 = vmatprep.subr.bf16.mxu0 %v3462_v37  ;;  %v3540_v37 = vld [vmem:[%s4733_s1 + $0x704] ss:$24 sps:$4 sm:$0xff]  }
  0xd7   :  { %2021 = vmatpush1.bf16.msra.mxu1 %v3457_v38  ;;  %v3581_v38 = vld [vmem:[%s4735_s3 + $0x68] sm:$0xff]  }
  0xd8   :  { %2103 = vmatpush1.bf16.msra.mxu0 %v3460_v39  ;;  %2022 = vmatprep.subr.bf16.mxu1 %v3465_v40  ;;  %v3538_v39 = vld [vmem:[%s4733_s1 + $0x700] ss:$24 sps:$4 sm:$0xff]   ;;  %v3582_v40 = vld [vmem:[%s4735_s3 + $0x28] sm:$0xff]  }
  0xd9   :  { %2104 = vmatprep.subr.bf16.mxu0 %v3468_v41  ;;  %v3543_v41 = vld [vmem:[%s4733_s1 + $0x734] ss:$24 sps:$4 sm:$0xff]  }
  0xdb   :  { %2023 = vmatpush1.bf16.msra.mxu1 %v3463_v42  ;;  %v3583_v42 = vld [vmem:[%s4735_s3 + $0x70] sm:$0xff]  }
  0xdc   :  { %2105 = vmatpush1.bf16.msra.mxu0 %v3466_v43  ;;  %2024 = vmatprep.subr.bf16.mxu1 %v3471_v44 }
  0xdd   :  { %2106 = vmatprep.subr.bf16.mxu0 %v3474_v45  ;;  %v3541_v45 = vld [vmem:[%s4733_s1 + $0x730] ss:$24 sps:$4 sm:$0xff]  }
  0xdf   :  { %2025 = vmatpush1.bf16.msra.mxu1 %v3469_v46 }
  0xe0   :  { %2107 = vmatpush1.bf16.msra.mxu0 %v3472_v48  ;;  %2026 = vmatprep.subr.bf16.mxu1 %v3477_v49  ;;  %v3584_v48 = vld [vmem:[%s4735_s3 + $0x30] sm:$0xff]   ;;  %v3546_v49 = vld [vmem:[%s4733_s1 + $0x764] ss:$24 sps:$4 sm:$0xff]  }
  0xe1   :  { %2108 = vmatprep.subr.bf16.mxu0 %v3480_v50 }
  0xe3   :  { %2027 = vmatpush1.bf16.msra.mxu1 %v3475_v52  ;;  %v3585_v52 = vld [vmem:[%s4735_s3 + $0x78] sm:$0xff]  }
  0xe4   :  { %2109 = vmatpush1.bf16.msra.mxu0 %v3478_v53  ;;  %2028 = vmatprep.subr.bf16.mxu1 %v3483_v54  ;;  %v3544_v53 = vld [vmem:[%s4733_s1 + $0x760] ss:$24 sps:$4 sm:$0xff]  }
  0xe5   :  { %2110 = vmatprep.subr.bf16.mxu0 %v3486_v55  ;;  %v3586_v54 = vld [vmem:[%s4735_s3 + $0x38] sm:$0xff]   ;;  %v3549_v55 = vld [vmem:[%s4733_s1 + $0x794] ss:$24 sps:$4 sm:$0xff]  }
  0xe7   :  { %2029 = vmatpush1.bf16.msra.mxu1 %v3481_v56  ;;  %v3587_v56 = vld [vmem:[%s4735_s3 + $0xc0] sm:$0xff]  }
  0xe8   :  { %2111 = vmatpush1.bf16.msra.mxu0 %v3484_v57  ;;  %2030 = vmatprep.subr.bf16.mxu1 %v3489_v58  ;;  %v3547_v57 = vld [vmem:[%s4733_s1 + $0x790] ss:$24 sps:$4 sm:$0xff]   ;;  %v3552_v58 = vld [vmem:[%s4733_s1 + $0x7c4] ss:$24 sps:$4 sm:$0xff]  }
  0xe9   :  { %2112 = vmatprep.subr.bf16.mxu0 %v3492_v59  ;;  %v3550_v59 = vld [vmem:[%s4733_s1 + $0x7c0] ss:$24 sps:$4 sm:$0xff]  }
  0xeb   :  { %2031 = vmatpush1.bf16.msra.mxu1 %v3487_v60  ;;  %v3555_v60 = vld [vmem:[%s4733_s1 + $0x7f4] ss:$24 sps:$4 sm:$0xff]  }
  0xec   :  { %2113 = vmatpush1.bf16.msra.mxu0 %v3490_v61  ;;  %2032 = vmatprep.subr.bf16.mxu1 %v3495_v62  ;;  %v3553_v61 = vld [vmem:[%s4733_s1 + $0x7f0] ss:$24 sps:$4 sm:$0xff]   ;;  %v3558_v62 = vld [vmem:[%s4733_s1 + $0x824] ss:$24 sps:$4 sm:$0xff]  }
  0xed   :  { %2114 = vmatprep.subr.bf16.mxu0 %v3498_v63  ;;  %v3556_v63 = vld [vmem:[%s4733_s1 + $0x820] ss:$24 sps:$4 sm:$0xff]  }
  0xef   :  { %2033 = vmatpush1.bf16.msra.mxu1 %v3493_v0  ;;  %v3561_v0 = vld [vmem:[%s4733_s1 + $0x854] ss:$24 sps:$4 sm:$0xff]  }
  0xf0   :  { %2115 = vmatpush1.bf16.msra.mxu0 %v3496_v1  ;;  %2034 = vmatprep.subr.bf16.mxu1 %v3501_v2  ;;  %v3559_v1 = vld [vmem:[%s4733_s1 + $0x850] ss:$24 sps:$4 sm:$0xff]   ;;  %v3564_v2 = vld [vmem:[%s4733_s1 + $0x884] ss:$24 sps:$4 sm:$0xff]  }
  0xf1   :  { %2116 = vmatprep.subr.bf16.mxu0 %v3504_v3  ;;  %v3562_v3 = vld [vmem:[%s4733_s1 + $0x880] ss:$24 sps:$4 sm:$0xff]  }
  0xf3   :  { %2035 = vmatpush1.bf16.msra.mxu1 %v3499_v4  ;;  %v3567_v4 = vld [vmem:[%s4733_s1 + $0x8b4] ss:$24 sps:$4 sm:$0xff]  }
  0xf4   :  { %2117 = vmatpush1.bf16.msra.mxu0 %v3502_v5  ;;  %2036 = vmatprep.subr.bf16.mxu1 %v3507_v8  ;;  %v3565_v5 = vld [vmem:[%s4733_s1 + $0x8b0] ss:$24 sps:$4 sm:$0xff]   ;;  %v3572_v8 = vld [vmem:[%s4733_s1 + $0x8e4] ss:$24 sps:$4 sm:$0xff]  }
  0xf5   :  { %2118 = vmatprep.subr.bf16.mxu0 %v3510_v9  ;;  %v3570_v9 = vld [vmem:[%s4733_s1 + $0x8e0] ss:$24 sps:$4 sm:$0xff]  }
  0xf7   :  { %2037 = vmatpush1.bf16.msra.mxu1 %v3505_v10  ;;  %v314_v10 = vlaneseq }
  0xf8   :  { %2119 = vmatpush1.bf16.msra.mxu0 %v3508_v11  ;;  %2038 = vmatprep.subr.bf16.mxu1 %v3513_v12 }
  0xf9   :  { %2120 = vmatprep.subr.bf16.mxu0 %v3516_v13  ;;  %v4613_v11 = vshrl.u32 %v314_v10, 7  ;;  %v4619_v13 = vld [vmem:[%s4736_s2] sm:$0x3f] }
  0xfb   :  { %2039 = vmatpush1.bf16.msra.mxu1 %v3511_v15  ;;  %v316_v12 = vsub.s32 0, %v4613_v11  ;;  %v320_v15 = vsub.s32 1, %v4613_v11 }
  0xfc   :  { %2121 = vmatpush1.bf16.msra.mxu0 %v3514_v16  ;;  %2040 = vmatprep.subr.bf16.mxu1 %v3519_v17 }
  0xfd   :  { %2122 = vmatprep.subr.bf16.mxu0 %v3522_v18  ;;  %v317_v16 = vrot.slane %v4619_v13, %v316_v12  ;;  %v321_v17 = vrot.slane %v4619_v13, %v320_v15 }
  0xff   :  { %2041 = vmatpush1.bf16.msra.mxu1 %v3517_v19 }
 0x100   :  { %2123 = vmatpush1.bf16.msra.mxu0 %v3520_v20  ;;  %3039 = vmatprep.subr.bf16.mxu1 %v3568_v22 }
 0x101   :  { %2133 = vmatprep.subr.bf16.mxu0 %v3525_v21 }
 0x102   :  { %2043 = vmatmul.mubr.bf16.vlgmr.msra.gmra.mrb[4].mxu1 %v4070_v14 }
 0x103   :  { %2125 = vmatmul.mubr.bf16.vlgmr.msra.gmra.mrb[4].mxu0 %v3861_v7  ;;  %3040 = vmatpush3.bf16.msra.mxu1 %v3569_v24  ;;  %v3575_v7 = vld [vmem:[%s4735_s3 + $0x50] sm:$0xff]  }
 0x104   :  { %2134 = vmatpush1.bf16.msra.mxu0 %v3523_v23  ;;  %3041 = vmatprep.subr.bf16.mxu1 %v3573_v47  ;;  %v3588_v47 = vld [vmem:[%s4735_s3 + $0x80] sm:$0xff]  }
 0x105   :  { %2135 = vmatprep.subr.bf16.mxu0 %v3528_v25  ;;  %2165 = vmatprep.mubr.bf16.mxu0 %v3948_v34  ;;  %v3577_v34 = vld [vmem:[%s4735_s3 + $0x58] sm:$0xff]  }
 0x107   :  { %3042 = vmatpush3.bf16.msra.mxu1 %v3574_v6  ;;  %v3589_v6 = vld [vmem:[%s4735_s3 + $0xc8] sm:$0xff]  }
 0x108   :  { %2136 = vmatpush1.bf16.msra.mxu0 %v3526_v26  ;;  %3043 = vmatprep.subr.bf16.mxu1 %v3575_v7  ;;  %v3591_v7 = vld [vmem:[%s4735_s3 + $0xd0] sm:$0xff]  }
 0x109   :  { %2137 = vmatprep.subr.bf16.mxu0 %v3531_v27  ;;  %v3590_v27 = vld [vmem:[%s4735_s3 + $0x88] sm:$0xff]  }
 0x10b   :  { %3044 = vmatpush3.bf16.msra.mxu1 %v3576_v29  ;;  %v3593_v29 = vld [vmem:[%s4735_s3 + $0xd8] sm:$0xff]  }
 0x10c   :  { %2138 = vmatpush1.bf16.msra.mxu0 %v3529_v28  ;;  %3045 = vmatprep.subr.bf16.mxu1 %v3577_v34  ;;  %v3592_v28 = vld [vmem:[%s4735_s3 + $0x90] sm:$0xff]   ;;  %v3595_v34 = vld [vmem:[%s4735_s3 + $0xe0] sm:$0xff]  }
 0x10d   :  { %2139 = vmatprep.subr.bf16.mxu0 %v3534_v51  ;;  %v3594_v51 = vld [vmem:[%s4735_s3 + $0x98] sm:$0xff]  }
 0x10f   :  { %3046 = vmatpush3.bf16.msra.mxu1 %v3578_v31  ;;  %v3597_v31 = vld [vmem:[%s4735_s3 + $0xe8] sm:$0xff]  }
 0x110   :  { %2140 = vmatpush1.bf16.msra.mxu0 %v3532_v30  ;;  %3047 = vmatprep.subr.bf16.mxu1 %v3579_v33  ;;  %v3596_v30 = vld [vmem:[%s4735_s3 + $0xa0] sm:$0xff]   ;;  %v3599_v33 = vld [vmem:[%s4735_s3 + $0xf0] sm:$0xff]  }
 0x111   :  { %2141 = vmatprep.subr.bf16.mxu0 %v3537_v32  ;;  %v3598_v32 = vld [vmem:[%s4735_s3 + $0xa8] sm:$0xff]  }
 0x113   :  { %3048 = vmatpush3.bf16.msra.mxu1 %v3580_v36  ;;  %v3601_v36 = vld [vmem:[%s4735_s3 + $0xf8] sm:$0xff]  }
 0x114   :  { %2142 = vmatpush1.bf16.msra.mxu0 %v3535_v35  ;;  %3049 = vmatprep.subr.bf16.mxu1 %v3581_v38  ;;  %v3600_v35 = vld [vmem:[%s4735_s3 + $0xb0] sm:$0xff]   ;;  %v3603_v38 = vld [vmem:[%s4735_s3 + $0x140] sm:$0xff]  }
 0x115   :  { %2143 = vmatprep.subr.bf16.mxu0 %v3540_v37  ;;  %v4539_v43 = vpop.f32.mrb[0].mxu1  ;;  %v3602_v37 = vld [vmem:[%s4735_s3 + $0xb8] sm:$0xff]  }
 0x116   :  { %v4541_v44 = vpop.f32.mrb[1].mxu1  ;;  %v1840_v18 = vadd.f32 %v4539_v43, %v317_v16 }
 0x117   :  { %v1843_v46 = vpop.f32.mrb[2].mxu1  ;;  %3050 = vmatpush3.bf16.msra.mxu1 %v3582_v40  ;;  %v328_v40 = vsub.s32 3, %v4613_v11 }
 0x118   :  { %2144 = vmatpush1.bf16.msra.mxu0 %v3538_v39  ;;  %v1844_v50 = vpop.f32.mrb[3].mxu1  ;;  %3051 = vmatprep.subr.bf16.mxu1 %v3583_v42  ;;  %v324_v39 = vsub.s32 2, %v4613_v11 }
 0x119   :  { %2145 = vmatprep.subr.bf16.mxu0 %v3543_v41  ;;  %v329_v42 = vrot.slane %v4619_v13, %v328_v40 }
 0x11a   :  { %v325_v41 = vrot.slane %v4619_v13, %v324_v39 }
 0x11b   :  { %3052 = vmatpush3.bf16.msra.mxu1 %v3584_v48 }
 0x11c   :  { %2146 = vmatpush1.bf16.msra.mxu0 %v3541_v45  ;;  %3053 = vmatprep.subr.bf16.mxu1 %v3585_v52  ;;  %v3604_v52 = vld [vmem:[%s4735_s3 + $0x100] sm:$0xff]  }
 0x11d   :  { %2147 = vmatprep.subr.bf16.mxu0 %v3546_v49 }
 0x11f   :  { %3054 = vmatpush3.bf16.msra.mxu1 %v3586_v54  ;;  %v3605_v54 = vld [vmem:[%s4735_s3 + $0x148] sm:$0xff]  }
 0x120   :  { %2148 = vmatpush1.bf16.msra.mxu0 %v3544_v53  ;;  %3061 = vmatprep.subr.bf16.mxu1 %v3587_v56  ;;  %v3607_v56 = vld [vmem:[%s4735_s3 + $0x150] sm:$0xff]  }
 0x121   :  { %2149 = vmatprep.subr.bf16.mxu0 %v3549_v55  ;;  %v3606_v55 = vld [vmem:[%s4735_s3 + $0x108] sm:$0xff]  }
 0x124   :  { %2150 = vmatpush1.bf16.msra.mxu0 %v3547_v57  ;;  %v3608_v57 = vld [vmem:[%s4735_s3 + $0x110] sm:$0xff]  }
 0x125   :  { %2151 = vmatprep.subr.bf16.mxu0 %v3552_v58  ;;  %v3609_v58 = vld [vmem:[%s4735_s3 + $0x158] sm:$0xff]  }
 0x128   :  { %2152 = vmatpush1.bf16.msra.mxu0 %v3550_v59  ;;  %v3610_v59 = vld [vmem:[%s4735_s3 + $0x118] sm:$0xff]  }
 0x129   :  { %2153 = vmatprep.subr.bf16.mxu0 %v3555_v60  ;;  %v3611_v60 = vld [vmem:[%s4735_s3 + $0x160] sm:$0xff]  }
 0x12c   :  { %2154 = vmatpush1.bf16.msra.mxu0 %v3553_v61  ;;  %v3612_v61 = vld [vmem:[%s4735_s3 + $0x120] sm:$0xff]  }
 0x12d   :  { %2155 = vmatprep.subr.bf16.mxu0 %v3558_v62  ;;  %v3613_v62 = vld [vmem:[%s4735_s3 + $0x168] sm:$0xff]  }
 0x130   :  { %2156 = vmatpush1.bf16.msra.mxu0 %v3556_v63  ;;  %v3614_v63 = vld [vmem:[%s4735_s3 + $0x128] sm:$0xff]  }
 0x131   :  { %2157 = vmatprep.subr.bf16.mxu0 %v3561_v0  ;;  %v3615_v0 = vld [vmem:[%s4735_s3 + $0x170] sm:$0xff]  }
 0x134   :  { %2158 = vmatpush1.bf16.msra.mxu0 %v3559_v1  ;;  %v3616_v1 = vld [vmem:[%s4735_s3 + $0x130] sm:$0xff]  }
 0x135   :  { %2159 = vmatprep.subr.bf16.mxu0 %v3564_v2  ;;  %v3617_v2 = vld [vmem:[%s4735_s3 + $0x178] sm:$0xff]  }
 0x138   :  { %2160 = vmatpush1.bf16.msra.mxu0 %v3562_v3  ;;  %v3618_v3 = vld [vmem:[%s4735_s3 + $0x138] sm:$0xff]  }
 0x139   :  { %2161 = vmatprep.subr.bf16.mxu0 %v3567_v4  ;;  %v332_v4 = vsub.s32 4, %v4613_v11 }
 0x13c   :  { %2162 = vmatpush1.bf16.msra.mxu0 %v3565_v5  ;;  %v336_v5 = vsub.s32 5, %v4613_v11  ;;  %v2990_v11 = vld [vmem:[%s4737_s4] ss:$0 sm:$0xff] }
 0x13d   :  { %2163 = vmatprep.subr.bf16.mxu0 %v3572_v8  ;;  %v333_v8 = vrot.slane %v4619_v13, %v332_v4 }
 0x140   :  { %2164 = vmatpush1.bf16.msra.mxu0 %v3570_v9  ;;  %v337_v9 = vrot.slane %v4619_v13, %v336_v5 }
 0x143   :  { %2166 = vmatmul.mubr.bf16.vlgmr.msra.gmra.mrb[4].mxu0 %v4070_v14  ;;  %v1842_v14 = vadd.f32 %v4541_v44, %v321_v17 }
 0x156   :  { %v1921_v19 = vpop.f32.mrb[0].mxu0 }
 0x157   :  { %v3106_v20 = vadd.f32 %v1921_v19, %v1840_v18  ;;  %v1923_v21 = vpop.f32.mrb[1].mxu0 }
 0x158   :  { %v3108_v22 = vadd.f32 %v1923_v21, %v1842_v14  ;;  %v1925_v23 = vpop.f32.mrb[2].mxu0 }
 0x159   :  { %v1926_v24 = vpop.f32.mrb[3].mxu0  ;;  %v2174_v26 = vpack.c.bf16 %v3106_v20, %v3106_v20 }
 0x15a   :  { %v2175_v25 = vpack.c.bf16 %v3108_v22, %v3108_v22 }
 0x15c   :  { %2603 = vmatprep.mubr.bf16.mxu1 %v2175_v25 }
 0x15d   :  { %2604 = vmatmul.mubr.bf16.vlgmr.msra.gmra.mrb[8].mxu1 %v2174_v26 }
 0x15e   :  { %3062 = vmatpush3.bf16.msra.mxu1 %v3588_v47 }
 0x15f   :  { %3063 = vmatprep.subr.bf16.mxu1 %v3589_v6 }
 0x162   :  { %3064 = vmatpush3.bf16.msra.mxu1 %v3590_v27 }
 0x163   :  { %3065 = vmatprep.subr.bf16.mxu1 %v3591_v7 }
 0x166   :  { %3066 = vmatpush3.bf16.msra.mxu1 %v3592_v28 }
 0x167   :  { %3067 = vmatprep.subr.bf16.mxu1 %v3593_v29 }
 0x16a   :  { %3068 = vmatpush3.bf16.msra.mxu1 %v3594_v51 }
 0x16b   :  { %3069 = vmatprep.subr.bf16.mxu1 %v3595_v34 }
 0x16e   :  { %3070 = vmatpush3.bf16.msra.mxu1 %v3596_v30 }
 0x16f   :  { %3071 = vmatprep.subr.bf16.mxu1 %v3597_v31 }
 0x172   :  { %3072 = vmatpush3.bf16.msra.mxu1 %v3598_v32 }
 0x173   :  { %3073 = vmatprep.subr.bf16.mxu1 %v3599_v33 }
 0x176   :  { %3074 = vmatpush3.bf16.msra.mxu1 %v3600_v35 }
 0x177   :  { %3075 = vmatprep.subr.bf16.mxu1 %v3601_v36 }
 0x17a   :  { %3076 = vmatpush3.bf16.msra.mxu1 %v3602_v37 }
 0x17b   :  { %3083 = vmatprep.subr.bf16.mxu1 %v3603_v38 }
 0x1d5   :  { %v2044_v43 = vpop.f32.mrb[4].mxu1 }
 0x1d6   :  { %v3109_v44 = vadd.f32 %v2044_v43, %v325_v41  ;;  %v2046_v45 = vpop.f32.mrb[5].mxu1 }
 0x1d7   :  { %v3110_v46 = vadd.f32 %v2046_v45, %v329_v42  ;;  %v2048_v48 = vpop.f32.mrb[6].mxu1 }
 0x1d8   :  { %v2049_v49 = vpop.f32.mrb[7].mxu1  ;;  %v2176_v53 = vpack.c.bf16 %v3109_v44, %v3109_v44 }
 0x1d9   :  { %v2177_v50 = vpack.c.bf16 %v3110_v46, %v3110_v46 }
 0x1db   :  { %2643 = vmatprep.mubr.bf16.mxu1 %v2177_v50 }
 0x1dc   :  { %2644 = vmatmul.mubr.bf16.vlgmr.msra.gmra.mrb[12].mxu1 %v2176_v53 }
 0x1dd   :  { %3084 = vmatpush3.bf16.msra.mxu1 %v3604_v52 }
 0x1de   :  { %3085 = vmatprep.subr.bf16.mxu1 %v3605_v54 }
 0x1e1   :  { %3086 = vmatpush3.bf16.msra.mxu1 %v3606_v55 }
 0x1e2   :  { %3087 = vmatprep.subr.bf16.mxu1 %v3607_v56 }
 0x1e5   :  { %3088 = vmatpush3.bf16.msra.mxu1 %v3608_v57 }
 0x1e6   :  { %3089 = vmatprep.subr.bf16.mxu1 %v3609_v58 }
 0x1e9   :  { %3090 = vmatpush3.bf16.msra.mxu1 %v3610_v59 }
 0x1ea   :  { %3091 = vmatprep.subr.bf16.mxu1 %v3611_v60 }
 0x1ed   :  { %3092 = vmatpush3.bf16.msra.mxu1 %v3612_v61 }
 0x1ee   :  { %3093 = vmatprep.subr.bf16.mxu1 %v3613_v62 }
 0x1f1   :  { %3094 = vmatpush3.bf16.msra.mxu1 %v3614_v63 }
 0x1f2   :  { %3095 = vmatprep.subr.bf16.mxu1 %v3615_v0 }
 0x1f5   :  { %3096 = vmatpush3.bf16.msra.mxu1 %v3616_v1 }
 0x1f6   :  { %3097 = vmatprep.subr.bf16.mxu1 %v3617_v2 }
 0x1f9   :  { %3098 = vmatpush3.bf16.msra.mxu1 %v3618_v3 }
 0x216   :  { %v2167_v10 = vpop.f32.mrb[4].mxu0 }
 0x217   :  { %v3111_v12 = vadd.f32 %v2167_v10, %v333_v8  ;;  %v2169_v15 = vpop.f32.mrb[5].mxu0 }
 0x218   :  { %v3112_v16 = vadd.f32 %v2169_v15, %v337_v9  ;;  %v2171_v17 = vpop.f32.mrb[6].mxu0 }
 0x219   :  { %v2172_v18 = vpop.f32.mrb[7].mxu0  ;;  %v2178_v19 = vpack.c.bf16 %v3111_v12, %v3111_v12 }
 0x21a   :  { %v2179_v14 = vpack.c.bf16 %v3112_v16, %v3112_v16 }
 0x21c   :  { %2683 = vmatprep.mubr.bf16.mxu1 %v2179_v14 }
 0x21d   :  { %2684 = vmatmul.mubr.bf16.vlgmr.msra.gmra.mrb[16].mxu1 %v2178_v19 }
 0x230   :  { %v3055_v20 = vpop.f32.mrb[8].mxu1 }
 0x231   :  { %v3056_v21 = vpop.f32.mrb[9].mxu1 }
 0x232   :  { %v3057_v22 = vadd.f32 %v3056_v21, %v3055_v20  ;;  %v3058_v23 = vpop.f32.mrb[10].mxu1 }
 0x233   :  { %v3059_v24 = vpop.f32.mrb[11].mxu1 }
 0x234   :  { %v2606_v47 = vadd.f32 %v3057_v22, %v2990_v11 }
 0x2af   :  { %v3077_v13 = vpop.f32.mrb[12].mxu1 }
 0x2b0   :  { %v3078_v25 = vpop.f32.mrb[13].mxu1 }
 0x2b1   :  { %v3079_v26 = vadd.f32 %v3078_v25, %v3077_v13  ;;  %v3080_v6 = vpop.f32.mrb[14].mxu1 }
 0x2b2   :  { %v3081_v27 = vpop.f32.mrb[15].mxu1 }
 0x2b3   :  { %v2646_v7 = vadd.f32 %v3079_v26, %v2606_v47 }
 0x2f0   :  { %v3099_v28 = vpop.f32.mrb[16].mxu1 }
 0x2f1   :  { %v3100_v29 = vpop.f32.mrb[17].mxu1 }
 0x2f2   :  { %v3101_v51 = vadd.f32 %v3100_v29, %v3099_v28  ;;  %v3102_v34 = vpop.f32.mrb[18].mxu1 }
 0x2f3   :  { %v3103_v30 = vpop.f32.mrb[19].mxu1 }
 0x2f4   :  { %v2686_v31 = vadd.f32 %v3101_v51, %v2646_v7 }
 0x2f6   :  { %2691 = vst [vmem:[%s4738_s5] sm:$0xff] %v2686_v31 }

</bundles_post_ra>
